<compile_context>
chip_gen: v5e
topology: v5e:2x2
jax: 0.10.0
libtpu: 0.0.40
codegen_flags: <defaults>
</compile_context>

<pallas_src>
import jax
import jax.numpy as jnp
from jax import lax
from jax.experimental import pallas as pl
from jax.experimental.pallas import tpu as pltpu

EPS = 1e-5
_VMEM_LIMIT = 32 * 1024 * 1024


# ----------------------------- Pallas kernels ------------------------------ #

def _conv_taps(xp_ref, w_ref, m_valid):
    """Banded 3x3 conv in the folded-row layout.

    xp_ref : (M, W*Cin) bf16 zero-row-padded scratch (M = nb*(H+2)).
    w_ref  : (3, W*Cin, W*Cout) bf16 banded weights (one band per dy tap).
    Returns (m_valid, W*Cout) f32 with m_valid = M-2; rows straddling image
    boundaries are garbage and are discarded by the caller.
    """
    z = jnp.dot(xp_ref[0:m_valid, :], w_ref[0],
                preferred_element_type=jnp.float32)
    z = z + jnp.dot(xp_ref[1:m_valid + 1, :], w_ref[1],
                    preferred_element_type=jnp.float32)
    z = z + jnp.dot(xp_ref[2:m_valid + 2, :], w_ref[2],
                    preferred_element_type=jnp.float32)
    return z


def _stage1_kernel(x_ref, w_ref, z_ref, stat_ref, xp_ref):
    """z1 = conv1(x) (bias absorbed by BN); resident sum / sum-of-squares."""
    nb, h, _ = x_ref.shape
    slot = h + 2
    m_valid = nb * slot - 2

    @pl.when(pl.program_id(0) == 0)
    def _init():
        # Stat accumulator + halo/separator rows: written exactly once; the
        # VMEM scratch and the resident stat block persist across grid steps.
        stat_ref[...] = jnp.zeros_like(stat_ref)
        zero = jnp.zeros((1, xp_ref.shape[1]), xp_ref.dtype)
        for i in range(nb):
            xp_ref[i * slot:i * slot + 1, :] = zero
            xp_ref[i * slot + h + 1:i * slot + h + 2, :] = zero

    # Interior rows (already bf16) — single store, no casts.
    for i in range(nb):
        xp_ref[i * slot + 1:i * slot + 1 + h, :] = x_ref[i]

    z = _conv_taps(xp_ref, w_ref, m_valid)            # (m_valid, W*Cout) f32

    s = jnp.zeros((1, z.shape[1]), jnp.float32)
    q = jnp.zeros((1, z.shape[1]), jnp.float32)
    for i in range(nb):
        zi = z[i * slot:i * slot + h]                 # drop straddle rows
        z_ref[i] = zi.astype(z_ref.dtype)             # bf16 inter-pass stream
        s = s + jnp.sum(zi, axis=0, keepdims=True)
        q = q + jnp.sum(zi * zi, axis=0, keepdims=True)
    stat_ref[0, 0:1, :] += s
    stat_ref[0, 1:2, :] += q


def _stage2_kernel(z1_ref, sc_ref, sh_ref, w_ref, z2_ref, stat_ref, yp_ref):
    """y1 = relu(bn1(z1)) fused; z2 = conv2(y1); resident moments."""
    nb, h, _ = z1_ref.shape
    slot = h + 2
    m_valid = nb * slot - 2

    @pl.when(pl.program_id(0) == 0)
    def _init():
        stat_ref[...] = jnp.zeros_like(stat_ref)
        zero = jnp.zeros((1, yp_ref.shape[1]), yp_ref.dtype)
        for i in range(nb):
            yp_ref[i * slot:i * slot + 1, :] = zero
            yp_ref[i * slot + h + 1:i * slot + h + 2, :] = zero

    sc = sc_ref[...]                                  # (1, W*Cout) f32
    sh = sh_ref[...]
    for i in range(nb):
        y = jnp.maximum(z1_ref[i].astype(jnp.float32) * sc + sh, 0.0)
        yp_ref[i * slot + 1:i * slot + 1 + h, :] = y.astype(yp_ref.dtype)

    z = _conv_taps(yp_ref, w_ref, m_valid)

    s = jnp.zeros((1, z.shape[1]), jnp.float32)
    q = jnp.zeros((1, z.shape[1]), jnp.float32)
    for i in range(nb):
        zi = z[i * slot:i * slot + h]
        z2_ref[i] = zi.astype(z2_ref.dtype)
        s = s + jnp.sum(zi, axis=0, keepdims=True)
        q = q + jnp.sum(zi * zi, axis=0, keepdims=True)
    stat_ref[0, 0:1, :] += s
    stat_ref[0, 1:2, :] += q


def _stage3_kernel(z2_ref, x_ref, sc_ref, sh_ref, wd_ref, bd_ref, o_ref):
    """out = relu(bn2(z2) + dct(x)); 1x1 dct as one block-diag matmul over
    all nb*H rows of the block (no row tiling)."""
    nb, h, wco = z2_ref.shape
    wci = x_ref.shape[2]
    hpart = (z2_ref[...].astype(jnp.float32).reshape(nb * h, wco)
             * sc_ref[...] + sh_ref[...])
    dct = jnp.dot(x_ref[...].reshape(nb * h, wci), wd_ref[...],
                  preferred_element_type=jnp.float32) + bd_ref[...]
    o_ref[...] = jnp.maximum(hpart + dct, 0.0).reshape(nb, h, wco)


# --------------------------- weight / stat folding -------------------------- #

def _banded_weight(w_oihw, width):
    """PyTorch (Cout,Cin,3,3) 3x3 weights -> (3, W*Cin, W*Cout) banded blocks.

    band[dy][w*Cin+cin, w'*Cout+cout] = W[cout, cin, dy, w-w'+1] if |w-w'|<=1,
    so dx taps and column zero-padding are absorbed into one deep-K matmul per
    dy tap in the folded (row, W*C) layout.
    """
    cout, cin = w_oihw.shape[:2]
    wt = jnp.transpose(w_oihw, (2, 3, 1, 0))            # (dy, dx, Cin, Cout)
    wsrc = jnp.arange(width)[:, None]                    # source column w
    wdst = jnp.arange(width)[None, :]                    # output column w'
    dx = wsrc - wdst + 1                                 # (W, W)
    valid = ((dx >= 0) & (dx <= 2)).astype(w_oihw.dtype)
    band = wt[:, jnp.clip(dx, 0, 2)]                     # (3, W, W, Cin, Cout)
    band = band * valid[None, :, :, None, None]
    band = jnp.transpose(band, (0, 1, 3, 2, 4))          # (3, W, Cin, W, Cout)
    return band.reshape(3, width * cin, width * cout)


def _blockdiag_weight(wd_oi11, width):
    """PyTorch (Cout,Cin,1,1) 1x1 weights -> (W*Cin, W*Cout) block-diagonal."""
    cout, cin = wd_oi11.shape[:2]
    wdt = jnp.transpose(wd_oi11[:, :, 0, 0])             # (Cin, Cout)
    eye = jnp.eye(width, dtype=wd_oi11.dtype)
    blk = eye[:, None, :, None] * wdt[None, :, None, :]  # (W, Cin, W, Cout)
    return blk.reshape(width * cin, width * cout)


def _bn_affine(stats, gamma, beta, count, width, cout):
    """Training-mode BN finalize: packed (1,2,W*Cout) moments -> scale/shift."""
    s = stats[0, 0].reshape(width, cout).sum(axis=0)      # (Cout,) f32
    q = stats[0, 1].reshape(width, cout).sum(axis=0)
    mean = s / count
    var = jnp.maximum(q / count - mean * mean, 0.0)        # guard cancellation
    scale = gamma * lax.rsqrt(var + EPS)
    shift = beta - mean * scale
    return (jnp.tile(scale, width).reshape(1, width * cout),
            jnp.tile(shift, width).reshape(1, width * cout))


def _pick_fold(n, h):
    """Images folded per grid step: push MXU M toward ~256 rows, dividing n."""
    limit = min(n, max(1, 256 // (h + 2)))
    for cand in range(limit, 0, -1):
        if n % cand == 0:
            return cand
    return 1


# ------------------------------- block wrapper ------------------------------ #

def init_params(key, cin, cout):
    """Deterministic parameter init; PyTorch layouts (OIHW conv weights)."""
    ks = jax.random.split(key, 6)
    return {
        "w1": jax.random.normal(ks[0], (cout, cin, 3, 3), jnp.float32) * 0.1,
        "b1": jax.random.normal(ks[1], (cout,), jnp.float32) * 0.1,
        "w2": jax.random.normal(ks[2], (cout, cout, 3, 3), jnp.float32) * 0.1,
        "b2": jax.random.normal(ks[3], (cout,), jnp.float32) * 0.1,
        "wd": jax.random.normal(ks[4], (cout, cin, 1, 1), jnp.float32) * 0.1,
        "bd": jax.random.normal(ks[5], (cout,), jnp.float32) * 0.1,
        "g1": jnp.ones((cout,), jnp.float32),   # BN1 weight (PyTorch default)
        "be1": jnp.zeros((cout,), jnp.float32),  # BN1 bias
        "g2": jnp.ones((cout,), jnp.float32),
        "be2": jnp.zeros((cout,), jnp.float32),
    }


@jax.jit
def dct_residual_block(x_nchw, p):
    n, cin, h, w = x_nchw.shape
    cout = p["w1"].shape[0]
    wci, wco = w * cin, w * cout
    nb = _pick_fold(n, h)          # images per grid step (M = nb*(h+2)-2 rows)
    nblk = n // nb
    slot = h + 2

    # Folded row layout (N, H, W*C): W*C on lanes, rows on sublanes.  These
    # two wrapper transposes vanish if the surrounding model keeps this layout.
    x_f = (jnp.transpose(x_nchw, (0, 2, 3, 1))
           .reshape(n, h, wci).astype(jnp.bfloat16))

    # Conv weights pre-folded once (bf16 MXU operands).  Conv biases b1/b2 are
    # intentionally unused: training-mode BN absorbs them exactly.
    w1b = _banded_weight(p["w1"], w).astype(jnp.bfloat16)      # (3, W*Cin, W*Cout)
    w2b = _banded_weight(p["w2"], w).astype(jnp.bfloat16)      # (3, W*Cout, W*Cout)
    wdb = _blockdiag_weight(p["wd"], w).astype(jnp.bfloat16)   # (W*Cin, W*Cout)
    bd_f = jnp.tile(p["bd"], w).reshape(1, wco)

    # "arbitrary" on the block axis is required: the stat output is a resident
    # accumulator and the halo init runs only at program_id == 0.
    cp_arb = pltpu.CompilerParams(dimension_semantics=("arbitrary",),
                                  vmem_limit_bytes=_VMEM_LIMIT)
    cp_par = pltpu.CompilerParams(dimension_semantics=("parallel",),
                                  vmem_limit_bytes=_VMEM_LIMIT)

    # ---- Pass 1: conv1 + resident packed moments. ----
    z1, st1 = pl.pallas_call(
        _stage1_kernel,
        grid=(nblk,),
        in_specs=[pl.BlockSpec((nb, h, wci), lambda i: (i, 0, 0)),
                  pl.BlockSpec((3, wci, wco), lambda i: (0, 0, 0))],
        out_specs=[pl.BlockSpec((nb, h, wco), lambda i: (i, 0, 0)),
                   pl.BlockSpec((1, 2, wco), lambda i: (0, 0, 0))],
        out_shape=[jax.ShapeDtypeStruct((n, h, wco), jnp.bfloat16),
                   jax.ShapeDtypeStruct((1, 2, wco), jnp.float32)],
        scratch_shapes=[pltpu.VMEM((nb * slot, wci), jnp.bfloat16)],
        compiler_params=cp_arb,
    )(x_f, w1b)

    scale1, shift1 = _bn_affine(st1, p["g1"], p["be1"], n * h * w, w, cout)

    # ---- Pass 2: bn1 + relu fused in-kernel -> conv2 + resident moments. ----
    z2, st2 = pl.pallas_call(
        _stage2_kernel,
        grid=(nblk,),
        in_specs=[pl.BlockSpec((nb, h, wco), lambda i: (i, 0, 0)),
                  pl.BlockSpec((1, wco), lambda i: (0, 0)),
                  pl.BlockSpec((1, wco), lambda i: (0, 0)),
                  pl.BlockSpec((3, wco, wco), lambda i: (0, 0, 0))],
        out_specs=[pl.BlockSpec((nb, h, wco), lambda i: (i, 0, 0)),
                   pl.BlockSpec((1, 2, wco), lambda i: (0, 0, 0))],
        out_shape=[jax.ShapeDtypeStruct((n, h, wco), jnp.bfloat16),
                   jax.ShapeDtypeStruct((1, 2, wco), jnp.float32)],
        scratch_shapes=[pltpu.VMEM((nb * slot, wco), jnp.bfloat16)],
        compiler_params=cp_arb,
    )(z1, scale1, shift1, w2b)

    scale2, shift2 = _bn_affine(st2, p["g2"], p["be2"], n * h * w, w, cout)

    # ---- Pass 3: bn2 + fused 1x1 dct + residual ReLU (full blocks). ----
    out_f = pl.pallas_call(
        _stage3_kernel,
        grid=(nblk,),
        in_specs=[pl.BlockSpec((nb, h, wco), lambda i: (i, 0, 0)),
                  pl.BlockSpec((nb, h, wci), lambda i: (i, 0, 0)),
                  pl.BlockSpec((1, wco), lambda i: (0, 0)),
                  pl.BlockSpec((1, wco), lambda i: (0, 0)),
                  pl.BlockSpec((wci, wco), lambda i: (0, 0)),
                  pl.BlockSpec((1, wco), lambda i: (0, 0))],
        out_specs=pl.BlockSpec((nb, h, wco), lambda i: (i, 0, 0)),
        out_shape=jax.ShapeDtypeStruct((n, h, wco), jnp.float32),
        compiler_params=cp_par,
    )(z2, x_f, scale2, shift2, wdb, bd_f)

    out = out_f.reshape(n, h, w, cout)
    return jnp.transpose(out, (0, 3, 1, 2))                # back to NCHW


# Pure-JAX f32 reference (mirrors the PyTorch forward, training-mode BN,
# including the conv biases that the kernels absorb into BN).
def reference(x, p):
    def conv(x, w, b, pad):
        y = lax.conv_general_dilated(x, w, (1, 1), [(pad, pad), (pad, pad)],
                                     dimension_numbers=("NCHW", "OIHW", "NCHW"))
        return y + b[None, :, None, None]

    def bn(x, g, be):
        mean = jnp.mean(x, axis=(0, 2, 3), keepdims=True)
        var = jnp.mean(jnp.square(x - mean), axis=(0, 2, 3), keepdims=True)
        return ((x - mean) / jnp.sqrt(var + EPS) * g[None, :, None, None]
                + be[None, :, None, None])

    dct = conv(x, p["wd"], p["bd"], 0)
    h = jax.nn.relu(bn(conv(x, p["w1"], p["b1"], 1), p["g1"], p["be1"]))
    h = bn(conv(h, p["w2"], p["b2"], 1), p["g2"], p["be2"])
    return jax.nn.relu(h + dct)


if __name__ == "__main__":
    key = jax.random.PRNGKey(0)
    kx, kp = jax.random.split(key)

    N, Cin, Cout, H, W = 2, 4, 8, 16, 16
    x = jax.random.normal(kx, (N, Cin, H, W), jnp.float32)
    params = init_params(kp, Cin, Cout)

    out = jax.block_until_ready(dct_residual_block(x, params))
    assert out.shape == (N, Cout, H, W), out.shape

    ref = reference(x, params)
    # bf16 MXU operands + bf16 inter-pass streams through two conv+BN stages
    # -> bf16-level tolerance.
    max_err = float(jnp.max(jnp.abs(out - ref)))
    assert jnp.allclose(out, ref, atol=8e-2, rtol=8e-2), f"max_err={max_err}"

    print("KERNEL_OK")
</pallas_src>

<mosaic_0001>
module attributes {stable_mosaic.version = 11 : i64} {
  func.func @_stage1_kernel(%arg0: i32, %arg1: memref<2x16x64xbf16, #tpu.memory_space<vmem>>, %arg2: memref<3x64x128xbf16, #tpu.memory_space<vmem>>, %arg3: memref<2x16x128xbf16, #tpu.memory_space<vmem>>, %arg4: memref<1x2x128xf32, #tpu.memory_space<vmem>>, %arg5: memref<36x64xbf16, #tpu.memory_space<vmem>>) attributes {dimension_semantics = [#tpu.dimension_semantics<arbitrary>], iteration_bounds = array<i64: 1>, scalar_prefetch = 0 : i64, scratch_operands = 1 : i64, tpu.core_type = #tpu.core_type<tc>, window_params = [{transform_indices = @transform_0, window_bounds = array<i64: 2, 16, 64>}, {pipeline_mode = #tpu.pipeline_mode<synchronous>, transform_indices = @transform_1, window_bounds = array<i64: 3, 64, 128>}, {transform_indices = @transform_2, window_bounds = array<i64: 2, 16, 128>}, {pipeline_mode = #tpu.pipeline_mode<synchronous>, transform_indices = @transform_3, window_bounds = array<i64: 1, 2, 128>}]} {
    %c0_i32 = arith.constant 0 : i32
    %0 = arith.cmpi eq, %arg0, %c0_i32 : i32
    %1 = arith.extui %0 : i1 to i32
    %c0_i32_0 = arith.constant 0 : i32
    %2 = arith.cmpi ne, %1, %c0_i32_0 : i32
    scf.if %2 {
      %cst_48 = arith.constant 0.000000e+00 : f32
      %61 = vector.broadcast %cst_48 : f32 to vector<1x2x128xf32>
      %c0_49 = arith.constant 0 : index
      %c0_50 = arith.constant 0 : index
      %c0_51 = arith.constant 0 : index
      %62 = vector.load %arg4[%c0_49, %c0_50, %c0_51] : memref<1x2x128xf32, #tpu.memory_space<vmem>>, vector<1x2x128xf32>
      tpu.vector_store %arg4[%c0_49, %c0_50, %c0_51], %61 {strides = array<i32>} : memref<1x2x128xf32, #tpu.memory_space<vmem>>, vector<1x2x128xf32>,
      %cst_52 = arith.constant 0.000000e+00 : bf16
      %63 = vector.broadcast %cst_52 : bf16 to vector<1x64xbf16>
      %c0_53 = arith.constant 0 : index
      %c0_54 = arith.constant 0 : index
      %64 = vector.load %arg5[%c0_53, %c0_54] : memref<36x64xbf16, #tpu.memory_space<vmem>>, vector<1x64xbf16>
      tpu.vector_store %arg5[%c0_53, %c0_54], %63 {strides = array<i32>} : memref<36x64xbf16, #tpu.memory_space<vmem>>, vector<1x64xbf16>,
      %c17 = arith.constant 17 : index
      %c0_55 = arith.constant 0 : index
      %65 = vector.load %arg5[%c17, %c0_55] : memref<36x64xbf16, #tpu.memory_space<vmem>>, vector<1x64xbf16>
      tpu.vector_store %arg5[%c17, %c0_55], %63 {strides = array<i32>} : memref<36x64xbf16, #tpu.memory_space<vmem>>, vector<1x64xbf16>,
      %c18 = arith.constant 18 : index
      %c0_56 = arith.constant 0 : index
      %66 = vector.load %arg5[%c18, %c0_56] : memref<36x64xbf16, #tpu.memory_space<vmem>>, vector<1x64xbf16>
      tpu.vector_store %arg5[%c18, %c0_56], %63 {strides = array<i32>} : memref<36x64xbf16, #tpu.memory_space<vmem>>, vector<1x64xbf16>,
      %c35 = arith.constant 35 : index
      %c0_57 = arith.constant 0 : index
      %67 = vector.load %arg5[%c35, %c0_57] : memref<36x64xbf16, #tpu.memory_space<vmem>>, vector<1x64xbf16>
      tpu.vector_store %arg5[%c35, %c0_57], %63 {strides = array<i32>} : memref<36x64xbf16, #tpu.memory_space<vmem>>, vector<1x64xbf16>,
    } else {
    }
    %c0 = arith.constant 0 : index
    %c0_1 = arith.constant 0 : index
    %c0_2 = arith.constant 0 : index
    %3 = vector.load %arg1[%c0, %c0_1, %c0_2] : memref<2x16x64xbf16, #tpu.memory_space<vmem>>, vector<1x16x64xbf16>
    %4 = vector.shape_cast %3 : vector<1x16x64xbf16> to vector<16x64xbf16>
    %c1 = arith.constant 1 : index
    %c0_3 = arith.constant 0 : index
    %5 = vector.load %arg5[%c1, %c0_3] : memref<36x64xbf16, #tpu.memory_space<vmem>>, vector<16x64xbf16>
    tpu.vector_store %arg5[%c1, %c0_3], %4 {strides = array<i32>} : memref<36x64xbf16, #tpu.memory_space<vmem>>, vector<16x64xbf16>,
    %c1_4 = arith.constant 1 : index
    %c0_5 = arith.constant 0 : index
    %c0_6 = arith.constant 0 : index
    %6 = vector.load %arg1[%c1_4, %c0_5, %c0_6] : memref<2x16x64xbf16, #tpu.memory_space<vmem>>, vector<1x16x64xbf16>
    %7 = vector.shape_cast %6 : vector<1x16x64xbf16> to vector<16x64xbf16>
    %c19 = arith.constant 19 : index
    %c0_7 = arith.constant 0 : index
    %8 = vector.load %arg5[%c19, %c0_7] : memref<36x64xbf16, #tpu.memory_space<vmem>>, vector<16x64xbf16>
    tpu.vector_store %arg5[%c19, %c0_7], %7 {strides = array<i32>} : memref<36x64xbf16, #tpu.memory_space<vmem>>, vector<16x64xbf16>,
    %c0_8 = arith.constant 0 : index
    %c0_9 = arith.constant 0 : index
    %9 = vector.load %arg5[%c0_8, %c0_9] : memref<36x64xbf16, #tpu.memory_space<vmem>>, vector<34x64xbf16>
    %c0_10 = arith.constant 0 : index
    %c0_11 = arith.constant 0 : index
    %c0_12 = arith.constant 0 : index
    %10 = vector.load %arg2[%c0_10, %c0_11, %c0_12] : memref<3x64x128xbf16, #tpu.memory_space<vmem>>, vector<1x64x128xbf16>
    %11 = vector.shape_cast %10 : vector<1x64x128xbf16> to vector<64x128xbf16>
    %cst = arith.constant dense<0.000000e+00> : vector<34x128xf32>
    %12 = tpu.matmul %9, %11, %cst {dimension_numbers = #tpu.dot_dimension_numbers<[1], [0], [0], [1], [0, 0, 1, 1], [], []>} : vector<34x64xbf16>, vector<64x128xbf16>, vector<34x128xf32> -> vector<34x128xf32>
    %c1_13 = arith.constant 1 : index
    %c0_14 = arith.constant 0 : index
    %13 = vector.load %arg5[%c1_13, %c0_14] : memref<36x64xbf16, #tpu.memory_space<vmem>>, vector<34x64xbf16>
    %c1_15 = arith.constant 1 : index
    %c0_16 = arith.constant 0 : index
    %c0_17 = arith.constant 0 : index
    %14 = vector.load %arg2[%c1_15, %c0_16, %c0_17] : memref<3x64x128xbf16, #tpu.memory_space<vmem>>, vector<1x64x128xbf16>
    %15 = vector.shape_cast %14 : vector<1x64x128xbf16> to vector<64x128xbf16>
    %cst_18 = arith.constant dense<0.000000e+00> : vector<34x128xf32>
    %16 = tpu.matmul %13, %15, %cst_18 {dimension_numbers = #tpu.dot_dimension_numbers<[1], [0], [0], [1], [0, 0, 1, 1], [], []>} : vector<34x64xbf16>, vector<64x128xbf16>, vector<34x128xf32> -> vector<34x128xf32>
    %17 = arith.addf %12, %16 : vector<34x128xf32>
    %c2 = arith.constant 2 : index
    %c0_19 = arith.constant 0 : index
    %18 = vector.load %arg5[%c2, %c0_19] : memref<36x64xbf16, #tpu.memory_space<vmem>>, vector<34x64xbf16>
    %c2_20 = arith.constant 2 : index
    %c0_21 = arith.constant 0 : index
    %c0_22 = arith.constant 0 : index
    %19 = vector.load %arg2[%c2_20, %c0_21, %c0_22] : memref<3x64x128xbf16, #tpu.memory_space<vmem>>, vector<1x64x128xbf16>
    %20 = vector.shape_cast %19 : vector<1x64x128xbf16> to vector<64x128xbf16>
    %cst_23 = arith.constant dense<0.000000e+00> : vector<34x128xf32>
    %21 = tpu.matmul %18, %20, %cst_23 {dimension_numbers = #tpu.dot_dimension_numbers<[1], [0], [0], [1], [0, 0, 1, 1], [], []>} : vector<34x64xbf16>, vector<64x128xbf16>, vector<34x128xf32> -> vector<34x128xf32>
    %22 = arith.addf %17, %21 : vector<34x128xf32>
    %cst_24 = arith.constant 0.000000e+00 : f32
    %23 = vector.broadcast %cst_24 : f32 to vector<1x128xf32>
    %cst_25 = arith.constant 0.000000e+00 : f32
    %24 = vector.broadcast %cst_25 : f32 to vector<1x128xf32>
    %25 = vector.extract_strided_slice %22 {offsets = [0, 0], sizes = [16, 128], strides = [1, 1]} : vector<34x128xf32> to vector<16x128xf32>
    %26 = arith.truncf %25 : vector<16x128xf32> to vector<16x128xbf16>
    %c0_26 = arith.constant 0 : index
    %c0_27 = arith.constant 0 : index
    %c0_28 = arith.constant 0 : index
    %27 = vector.load %arg3[%c0_26, %c0_27, %c0_28] : memref<2x16x128xbf16, #tpu.memory_space<vmem>>, vector<1x16x128xbf16>
    %28 = vector.shape_cast %27 : vector<1x16x128xbf16> to vector<16x128xbf16>
    %29 = vector.shape_cast %26 : vector<16x128xbf16> to vector<1x16x128xbf16>
    tpu.vector_store %arg3[%c0_26, %c0_27, %c0_28], %29 {strides = array<i32>} : memref<2x16x128xbf16, #tpu.memory_space<vmem>>, vector<1x16x128xbf16>,
    %cst_29 = arith.constant dense<0.000000e+00> : vector<128xf32>
    %30 = vector.multi_reduction <add>, %25, %cst_29 [0] : vector<16x128xf32> to vector<128xf32>
    %31 = vector.shape_cast %30 : vector<128xf32> to vector<1x128xf32>
    %32 = arith.addf %23, %31 : vector<1x128xf32>
    %33 = arith.mulf %25, %25 : vector<16x128xf32>
    %cst_30 = arith.constant dense<0.000000e+00> : vector<128xf32>
    %34 = vector.multi_reduction <add>, %33, %cst_30 [0] : vector<16x128xf32> to vector<128xf32>
    %35 = vector.shape_cast %34 : vector<128xf32> to vector<1x128xf32>
    %36 = arith.addf %24, %35 : vector<1x128xf32>
    %37 = vector.extract_strided_slice %22 {offsets = [18, 0], sizes = [16, 128], strides = [1, 1]} : vector<34x128xf32> to vector<16x128xf32>
    %38 = arith.truncf %37 : vector<16x128xf32> to vector<16x128xbf16>
    %c1_31 = arith.constant 1 : index
    %c0_32 = arith.constant 0 : index
    %c0_33 = arith.constant 0 : index
    %39 = vector.load %arg3[%c1_31, %c0_32, %c0_33] : memref<2x16x128xbf16, #tpu.memory_space<vmem>>, vector<1x16x128xbf16>
    %40 = vector.shape_cast %39 : vector<1x16x128xbf16> to vector<16x128xbf16>
    %41 = vector.shape_cast %38 : vector<16x128xbf16> to vector<1x16x128xbf16>
    tpu.vector_store %arg3[%c1_31, %c0_32, %c0_33], %41 {strides = array<i32>} : memref<2x16x128xbf16, #tpu.memory_space<vmem>>, vector<1x16x128xbf16>,
    %cst_34 = arith.constant dense<0.000000e+00> : vector<128xf32>
    %42 = vector.multi_reduction <add>, %37, %cst_34 [0] : vector<16x128xf32> to vector<128xf32>
    %43 = vector.shape_cast %42 : vector<128xf32> to vector<1x128xf32>
    %44 = arith.addf %32, %43 : vector<1x128xf32>
    %45 = arith.mulf %37, %37 : vector<16x128xf32>
    %cst_35 = arith.constant dense<0.000000e+00> : vector<128xf32>
    %46 = vector.multi_reduction <add>, %45, %cst_35 [0] : vector<16x128xf32> to vector<128xf32>
    %47 = vector.shape_cast %46 : vector<128xf32> to vector<1x128xf32>
    %48 = arith.addf %36, %47 : vector<1x128xf32>
    %c0_36 = arith.constant 0 : index
    %c0_37 = arith.constant 0 : index
    %c0_38 = arith.constant 0 : index
    %49 = vector.load %arg4[%c0_36, %c0_37, %c0_38] : memref<1x2x128xf32, #tpu.memory_space<vmem>>, vector<1x1x128xf32>
    %50 = vector.shape_cast %49 : vector<1x1x128xf32> to vector<1x128xf32>
    %51 = arith.addf %50, %44 : vector<1x128xf32>
    %c0_39 = arith.constant 0 : index
    %c0_40 = arith.constant 0 : index
    %c0_41 = arith.constant 0 : index
    %52 = vector.load %arg4[%c0_39, %c0_40, %c0_41] : memref<1x2x128xf32, #tpu.memory_space<vmem>>, vector<1x1x128xf32>
    %53 = vector.shape_cast %52 : vector<1x1x128xf32> to vector<1x128xf32>
    %54 = vector.shape_cast %51 : vector<1x128xf32> to vector<1x1x128xf32>
    tpu.vector_store %arg4[%c0_39, %c0_40, %c0_41], %54 {strides = array<i32>} : memref<1x2x128xf32, #tpu.memory_space<vmem>>, vector<1x1x128xf32>,
    %c0_42 = arith.constant 0 : index
    %c1_43 = arith.constant 1 : index
    %c0_44 = arith.constant 0 : index
    %55 = vector.load %arg4[%c0_42, %c1_43, %c0_44] : memref<1x2x128xf32, #tpu.memory_space<vmem>>, vector<1x1x128xf32>
    %56 = vector.shape_cast %55 : vector<1x1x128xf32> to vector<1x128xf32>
    %57 = arith.addf %56, %48 : vector<1x128xf32>
    %c0_45 = arith.constant 0 : index
    %c1_46 = arith.constant 1 : index
    %c0_47 = arith.constant 0 : index
    %58 = vector.load %arg4[%c0_45, %c1_46, %c0_47] : memref<1x2x128xf32, #tpu.memory_space<vmem>>, vector<1x1x128xf32>
    %59 = vector.shape_cast %58 : vector<1x1x128xf32> to vector<1x128xf32>
    %60 = vector.shape_cast %57 : vector<1x128xf32> to vector<1x1x128xf32>
    tpu.vector_store %arg4[%c0_45, %c1_46, %c0_47], %60 {strides = array<i32>} : memref<1x2x128xf32, #tpu.memory_space<vmem>>, vector<1x1x128xf32>,
    return
  }
  func.func @transform_0(%arg0: i32) -> (i32, i32, i32) {
    %c0_i32 = arith.constant 0 : i32
    %c0_i32_0 = arith.constant 0 : i32
    %c0_i32_1 = arith.constant 0 : i32
    return %arg0, %c0_i32, %c0_i32_0 : i32, i32, i32
  }
  func.func @transform_1(%arg0: i32) -> (i32, i32, i32) {
    %c0_i32 = arith.constant 0 : i32
    %c0_i32_0 = arith.constant 0 : i32
    %c0_i32_1 = arith.constant 0 : i32
    %c0_i32_2 = arith.constant 0 : i32
    return %c0_i32, %c0_i32_0, %c0_i32_1 : i32, i32, i32
  }
  func.func @transform_2(%arg0: i32) -> (i32, i32, i32) {
    %c0_i32 = arith.constant 0 : i32
    %c0_i32_0 = arith.constant 0 : i32
    %c0_i32_1 = arith.constant 0 : i32
    return %arg0, %c0_i32, %c0_i32_0 : i32, i32, i32
  }
  func.func @transform_3(%arg0: i32) -> (i32, i32, i32) {
    %c0_i32 = arith.constant 0 : i32
    %c0_i32_0 = arith.constant 0 : i32
    %c0_i32_1 = arith.constant 0 : i32
    %c0_i32_2 = arith.constant 0 : i32
    return %c0_i32, %c0_i32_0, %c0_i32_1 : i32, i32, i32
  }
}

module attributes {stable_mosaic.version = 11 : i64} {
  func.func @_stage2_kernel(%arg0: i32, %arg1: memref<2x16x128xbf16, #tpu.memory_space<vmem>>, %arg2: memref<1x128xf32, #tpu.memory_space<vmem>>, %arg3: memref<1x128xf32, #tpu.memory_space<vmem>>, %arg4: memref<3x128x128xbf16, #tpu.memory_space<vmem>>, %arg5: memref<2x16x128xbf16, #tpu.memory_space<vmem>>, %arg6: memref<1x2x128xf32, #tpu.memory_space<vmem>>, %arg7: memref<36x128xbf16, #tpu.memory_space<vmem>>) attributes {dimension_semantics = [#tpu.dimension_semantics<arbitrary>], iteration_bounds = array<i64: 1>, scalar_prefetch = 0 : i64, scratch_operands = 1 : i64, tpu.core_type = #tpu.core_type<tc>, window_params = [{transform_indices = @transform_0, window_bounds = array<i64: 2, 16, 128>}, {pipeline_mode = #tpu.pipeline_mode<synchronous>, transform_indices = @transform_1, window_bounds = array<i64: 1, 128>}, {pipeline_mode = #tpu.pipeline_mode<synchronous>, transform_indices = @transform_2, window_bounds = array<i64: 1, 128>}, {pipeline_mode = #tpu.pipeline_mode<synchronous>, transform_indices = @transform_3, window_bounds = array<i64: 3, 128, 128>}, {transform_indices = @transform_4, window_bounds = array<i64: 2, 16, 128>}, {pipeline_mode = #tpu.pipeline_mode<synchronous>, transform_indices = @transform_5, window_bounds = array<i64: 1, 2, 128>}]} {
    %c0_i32 = arith.constant 0 : i32
    %0 = arith.cmpi eq, %arg0, %c0_i32 : i32
    %1 = arith.extui %0 : i1 to i32
    %c0_i32_0 = arith.constant 0 : i32
    %2 = arith.cmpi ne, %1, %c0_i32_0 : i32
    scf.if %2 {
      %cst_54 = arith.constant 0.000000e+00 : f32
      %79 = vector.broadcast %cst_54 : f32 to vector<1x2x128xf32>
      %c0_55 = arith.constant 0 : index
      %c0_56 = arith.constant 0 : index
      %c0_57 = arith.constant 0 : index
      %80 = vector.load %arg6[%c0_55, %c0_56, %c0_57] : memref<1x2x128xf32, #tpu.memory_space<vmem>>, vector<1x2x128xf32>
      tpu.vector_store %arg6[%c0_55, %c0_56, %c0_57], %79 {strides = array<i32>} : memref<1x2x128xf32, #tpu.memory_space<vmem>>, vector<1x2x128xf32>,
      %cst_58 = arith.constant 0.000000e+00 : bf16
      %81 = vector.broadcast %cst_58 : bf16 to vector<1x128xbf16>
      %c0_59 = arith.constant 0 : index
      %c0_60 = arith.constant 0 : index
      %82 = vector.load %arg7[%c0_59, %c0_60] : memref<36x128xbf16, #tpu.memory_space<vmem>>, vector<1x128xbf16>
      tpu.vector_store %arg7[%c0_59, %c0_60], %81 {strides = array<i32>} : memref<36x128xbf16, #tpu.memory_space<vmem>>, vector<1x128xbf16>,
      %c17 = arith.constant 17 : index
      %c0_61 = arith.constant 0 : index
      %83 = vector.load %arg7[%c17, %c0_61] : memref<36x128xbf16, #tpu.memory_space<vmem>>, vector<1x128xbf16>
      tpu.vector_store %arg7[%c17, %c0_61], %81 {strides = array<i32>} : memref<36x128xbf16, #tpu.memory_space<vmem>>, vector<1x128xbf16>,
      %c18 = arith.constant 18 : index
      %c0_62 = arith.constant 0 : index
      %84 = vector.load %arg7[%c18, %c0_62] : memref<36x128xbf16, #tpu.memory_space<vmem>>, vector<1x128xbf16>
      tpu.vector_store %arg7[%c18, %c0_62], %81 {strides = array<i32>} : memref<36x128xbf16, #tpu.memory_space<vmem>>, vector<1x128xbf16>,
      %c35 = arith.constant 35 : index
      %c0_63 = arith.constant 0 : index
      %85 = vector.load %arg7[%c35, %c0_63] : memref<36x128xbf16, #tpu.memory_space<vmem>>, vector<1x128xbf16>
      tpu.vector_store %arg7[%c35, %c0_63], %81 {strides = array<i32>} : memref<36x128xbf16, #tpu.memory_space<vmem>>, vector<1x128xbf16>,
    } else {
    }
    %c0 = arith.constant 0 : index
    %c0_1 = arith.constant 0 : index
    %3 = vector.load %arg2[%c0, %c0_1] : memref<1x128xf32, #tpu.memory_space<vmem>>, vector<1x128xf32>
    %c0_2 = arith.constant 0 : index
    %c0_3 = arith.constant 0 : index
    %4 = vector.load %arg3[%c0_2, %c0_3] : memref<1x128xf32, #tpu.memory_space<vmem>>, vector<1x128xf32>
    %c0_4 = arith.constant 0 : index
    %c0_5 = arith.constant 0 : index
    %c0_6 = arith.constant 0 : index
    %5 = vector.load %arg1[%c0_4, %c0_5, %c0_6] : memref<2x16x128xbf16, #tpu.memory_space<vmem>>, vector<1x16x128xbf16>
    %6 = vector.shape_cast %5 : vector<1x16x128xbf16> to vector<16x128xbf16>
    %7 = arith.extf %6 : vector<16x128xbf16> to vector<16x128xf32>
    %8 = vector.broadcast %3 : vector<1x128xf32> to vector<16x128xf32>
    %9 = arith.mulf %7, %8 : vector<16x128xf32>
    %10 = vector.broadcast %4 : vector<1x128xf32> to vector<16x128xf32>
    %11 = arith.addf %9, %10 : vector<16x128xf32>
    %cst = arith.constant 0.000000e+00 : f32
    %12 = vector.broadcast %cst : f32 to vector<16x128xf32>
    %13 = arith.maximumf %11, %12 : vector<16x128xf32>
    %14 = arith.truncf %13 : vector<16x128xf32> to vector<16x128xbf16>
    %c1 = arith.constant 1 : index
    %c0_7 = arith.constant 0 : index
    %15 = vector.load %arg7[%c1, %c0_7] : memref<36x128xbf16, #tpu.memory_space<vmem>>, vector<16x128xbf16>
    tpu.vector_store %arg7[%c1, %c0_7], %14 {strides = array<i32>} : memref<36x128xbf16, #tpu.memory_space<vmem>>, vector<16x128xbf16>,
    %c1_8 = arith.constant 1 : index
    %c0_9 = arith.constant 0 : index
    %c0_10 = arith.constant 0 : index
    %16 = vector.load %arg1[%c1_8, %c0_9, %c0_10] : memref<2x16x128xbf16, #tpu.memory_space<vmem>>, vector<1x16x128xbf16>
    %17 = vector.shape_cast %16 : vector<1x16x128xbf16> to vector<16x128xbf16>
    %18 = arith.extf %17 : vector<16x128xbf16> to vector<16x128xf32>
    %19 = vector.broadcast %3 : vector<1x128xf32> to vector<16x128xf32>
    %20 = arith.mulf %18, %19 : vector<16x128xf32>
    %21 = vector.broadcast %4 : vector<1x128xf32> to vector<16x128xf32>
    %22 = arith.addf %20, %21 : vector<16x128xf32>
    %cst_11 = arith.constant 0.000000e+00 : f32
    %23 = vector.broadcast %cst_11 : f32 to vector<16x128xf32>
    %24 = arith.maximumf %22, %23 : vector<16x128xf32>
    %25 = arith.truncf %24 : vector<16x128xf32> to vector<16x128xbf16>
    %c19 = arith.constant 19 : index
    %c0_12 = arith.constant 0 : index
    %26 = vector.load %arg7[%c19, %c0_12] : memref<36x128xbf16, #tpu.memory_space<vmem>>, vector<16x128xbf16>
    tpu.vector_store %arg7[%c19, %c0_12], %25 {strides = array<i32>} : memref<36x128xbf16, #tpu.memory_space<vmem>>, vector<16x128xbf16>,
    %c0_13 = arith.constant 0 : index
    %c0_14 = arith.constant 0 : index
    %27 = vector.load %arg7[%c0_13, %c0_14] : memref<36x128xbf16, #tpu.memory_space<vmem>>, vector<34x128xbf16>
    %c0_15 = arith.constant 0 : index
    %c0_16 = arith.constant 0 : index
    %c0_17 = arith.constant 0 : index
    %28 = vector.load %arg4[%c0_15, %c0_16, %c0_17] : memref<3x128x128xbf16, #tpu.memory_space<vmem>>, vector<1x128x128xbf16>
    %29 = vector.shape_cast %28 : vector<1x128x128xbf16> to vector<128x128xbf16>
    %cst_18 = arith.constant dense<0.000000e+00> : vector<34x128xf32>
    %30 = tpu.matmul %27, %29, %cst_18 {dimension_numbers = #tpu.dot_dimension_numbers<[1], [0], [0], [1], [0, 0, 1, 1], [], []>} : vector<34x128xbf16>, vector<128x128xbf16>, vector<34x128xf32> -> vector<34x128xf32>
    %c1_19 = arith.constant 1 : index
    %c0_20 = arith.constant 0 : index
    %31 = vector.load %arg7[%c1_19, %c0_20] : memref<36x128xbf16, #tpu.memory_space<vmem>>, vector<34x128xbf16>
    %c1_21 = arith.constant 1 : index
    %c0_22 = arith.constant 0 : index
    %c0_23 = arith.constant 0 : index
    %32 = vector.load %arg4[%c1_21, %c0_22, %c0_23] : memref<3x128x128xbf16, #tpu.memory_space<vmem>>, vector<1x128x128xbf16>
    %33 = vector.shape_cast %32 : vector<1x128x128xbf16> to vector<128x128xbf16>
    %cst_24 = arith.constant dense<0.000000e+00> : vector<34x128xf32>
    %34 = tpu.matmul %31, %33, %cst_24 {dimension_numbers = #tpu.dot_dimension_numbers<[1], [0], [0], [1], [0, 0, 1, 1], [], []>} : vector<34x128xbf16>, vector<128x128xbf16>, vector<34x128xf32> -> vector<34x128xf32>
    %35 = arith.addf %30, %34 : vector<34x128xf32>
    %c2 = arith.constant 2 : index
    %c0_25 = arith.constant 0 : index
    %36 = vector.load %arg7[%c2, %c0_25] : memref<36x128xbf16, #tpu.memory_space<vmem>>, vector<34x128xbf16>
    %c2_26 = arith.constant 2 : index
    %c0_27 = arith.constant 0 : index
    %c0_28 = arith.constant 0 : index
    %37 = vector.load %arg4[%c2_26, %c0_27, %c0_28] : memref<3x128x128xbf16, #tpu.memory_space<vmem>>, vector<1x128x128xbf16>
    %38 = vector.shape_cast %37 : vector<1x128x128xbf16> to vector<128x128xbf16>
    %cst_29 = arith.constant dense<0.000000e+00> : vector<34x128xf32>
    %39 = tpu.matmul %36, %38, %cst_29 {dimension_numbers = #tpu.dot_dimension_numbers<[1], [0], [0], [1], [0, 0, 1, 1], [], []>} : vector<34x128xbf16>, vector<128x128xbf16>, vector<34x128xf32> -> vector<34x128xf32>
    %40 = arith.addf %35, %39 : vector<34x128xf32>
    %cst_30 = arith.constant 0.000000e+00 : f32
    %41 = vector.broadcast %cst_30 : f32 to vector<1x128xf32>
    %cst_31 = arith.constant 0.000000e+00 : f32
    %42 = vector.broadcast %cst_31 : f32 to vector<1x128xf32>
    %43 = vector.extract_strided_slice %40 {offsets = [0, 0], sizes = [16, 128], strides = [1, 1]} : vector<34x128xf32> to vector<16x128xf32>
    %44 = arith.truncf %43 : vector<16x128xf32> to vector<16x128xbf16>
    %c0_32 = arith.constant 0 : index
    %c0_33 = arith.constant 0 : index
    %c0_34 = arith.constant 0 : index
    %45 = vector.load %arg5[%c0_32, %c0_33, %c0_34] : memref<2x16x128xbf16, #tpu.memory_space<vmem>>, vector<1x16x128xbf16>
    %46 = vector.shape_cast %45 : vector<1x16x128xbf16> to vector<16x128xbf16>
    %47 = vector.shape_cast %44 : vector<16x128xbf16> to vector<1x16x128xbf16>
    tpu.vector_store %arg5[%c0_32, %c0_33, %c0_34], %47 {strides = array<i32>} : memref<2x16x128xbf16, #tpu.memory_space<vmem>>, vector<1x16x128xbf16>,
    %cst_35 = arith.constant dense<0.000000e+00> : vector<128xf32>
    %48 = vector.multi_reduction <add>, %43, %cst_35 [0] : vector<16x128xf32> to vector<128xf32>
    %49 = vector.shape_cast %48 : vector<128xf32> to vector<1x128xf32>
    %50 = arith.addf %41, %49 : vector<1x128xf32>
    %51 = arith.mulf %43, %43 : vector<16x128xf32>
    %cst_36 = arith.constant dense<0.000000e+00> : vector<128xf32>
    %52 = vector.multi_reduction <add>, %51, %cst_36 [0] : vector<16x128xf32> to vector<128xf32>
    %53 = vector.shape_cast %52 : vector<128xf32> to vector<1x128xf32>
    %54 = arith.addf %42, %53 : vector<1x128xf32>
    %55 = vector.extract_strided_slice %40 {offsets = [18, 0], sizes = [16, 128], strides = [1, 1]} : vector<34x128xf32> to vector<16x128xf32>
    %56 = arith.truncf %55 : vector<16x128xf32> to vector<16x128xbf16>
    %c1_37 = arith.constant 1 : index
    %c0_38 = arith.constant 0 : index
    %c0_39 = arith.constant 0 : index
    %57 = vector.load %arg5[%c1_37, %c0_38, %c0_39] : memref<2x16x128xbf16, #tpu.memory_space<vmem>>, vector<1x16x128xbf16>
    %58 = vector.shape_cast %57 : vector<1x16x128xbf16> to vector<16x128xbf16>
    %59 = vector.shape_cast %56 : vector<16x128xbf16> to vector<1x16x128xbf16>
    tpu.vector_store %arg5[%c1_37, %c0_38, %c0_39], %59 {strides = array<i32>} : memref<2x16x128xbf16, #tpu.memory_space<vmem>>, vector<1x16x128xbf16>,
    %cst_40 = arith.constant dense<0.000000e+00> : vector<128xf32>
    %60 = vector.multi_reduction <add>, %55, %cst_40 [0] : vector<16x128xf32> to vector<128xf32>
    %61 = vector.shape_cast %60 : vector<128xf32> to vector<1x128xf32>
    %62 = arith.addf %50, %61 : vector<1x128xf32>
    %63 = arith.mulf %55, %55 : vector<16x128xf32>
    %cst_41 = arith.constant dense<0.000000e+00> : vector<128xf32>
    %64 = vector.multi_reduction <add>, %63, %cst_41 [0] : vector<16x128xf32> to vector<128xf32>
    %65 = vector.shape_cast %64 : vector<128xf32> to vector<1x128xf32>
    %66 = arith.addf %54, %65 : vector<1x128xf32>
    %c0_42 = arith.constant 0 : index
    %c0_43 = arith.constant 0 : index
    %c0_44 = arith.constant 0 : index
    %67 = vector.load %arg6[%c0_42, %c0_43, %c0_44] : memref<1x2x128xf32, #tpu.memory_space<vmem>>, vector<1x1x128xf32>
    %68 = vector.shape_cast %67 : vector<1x1x128xf32> to vector<1x128xf32>
    %69 = arith.addf %68, %62 : vector<1x128xf32>
    %c0_45 = arith.constant 0 : index
    %c0_46 = arith.constant 0 : index
    %c0_47 = arith.constant 0 : index
    %70 = vector.load %arg6[%c0_45, %c0_46, %c0_47] : memref<1x2x128xf32, #tpu.memory_space<vmem>>, vector<1x1x128xf32>
    %71 = vector.shape_cast %70 : vector<1x1x128xf32> to vector<1x128xf32>
    %72 = vector.shape_cast %69 : vector<1x128xf32> to vector<1x1x128xf32>
    tpu.vector_store %arg6[%c0_45, %c0_46, %c0_47], %72 {strides = array<i32>} : memref<1x2x128xf32, #tpu.memory_space<vmem>>, vector<1x1x128xf32>,
    %c0_48 = arith.constant 0 : index
    %c1_49 = arith.constant 1 : index
    %c0_50 = arith.constant 0 : index
    %73 = vector.load %arg6[%c0_48, %c1_49, %c0_50] : memref<1x2x128xf32, #tpu.memory_space<vmem>>, vector<1x1x128xf32>
    %74 = vector.shape_cast %73 : vector<1x1x128xf32> to vector<1x128xf32>
    %75 = arith.addf %74, %66 : vector<1x128xf32>
    %c0_51 = arith.constant 0 : index
    %c1_52 = arith.constant 1 : index
    %c0_53 = arith.constant 0 : index
    %76 = vector.load %arg6[%c0_51, %c1_52, %c0_53] : memref<1x2x128xf32, #tpu.memory_space<vmem>>, vector<1x1x128xf32>
    %77 = vector.shape_cast %76 : vector<1x1x128xf32> to vector<1x128xf32>
    %78 = vector.shape_cast %75 : vector<1x128xf32> to vector<1x1x128xf32>
    tpu.vector_store %arg6[%c0_51, %c1_52, %c0_53], %78 {strides = array<i32>} : memref<1x2x128xf32, #tpu.memory_space<vmem>>, vector<1x1x128xf32>,
    return
  }
  func.func @transform_0(%arg0: i32) -> (i32, i32, i32) {
    %c0_i32 = arith.constant 0 : i32
    %c0_i32_0 = arith.constant 0 : i32
    %c0_i32_1 = arith.constant 0 : i32
    return %arg0, %c0_i32, %c0_i32_0 : i32, i32, i32
  }
  func.func @transform_1(%arg0: i32) -> (i32, i32) {
    %c0_i32 = arith.constant 0 : i32
    %c0_i32_0 = arith.constant 0 : i32
    %c0_i32_1 = arith.constant 0 : i32
    return %c0_i32, %c0_i32_0 : i32, i32
  }
  func.func @transform_2(%arg0: i32) -> (i32, i32) {
    %c0_i32 = arith.constant 0 : i32
    %c0_i32_0 = arith.constant 0 : i32
    %c0_i32_1 = arith.constant 0 : i32
    return %c0_i32, %c0_i32_0 : i32, i32
  }
  func.func @transform_3(%arg0: i32) -> (i32, i32, i32) {
    %c0_i32 = arith.constant 0 : i32
    %c0_i32_0 = arith.constant 0 : i32
    %c0_i32_1 = arith.constant 0 : i32
    %c0_i32_2 = arith.constant 0 : i32
    return %c0_i32, %c0_i32_0, %c0_i32_1 : i32, i32, i32
  }
  func.func @transform_4(%arg0: i32) -> (i32, i32, i32) {
    %c0_i32 = arith.constant 0 : i32
    %c0_i32_0 = arith.constant 0 : i32
    %c0_i32_1 = arith.constant 0 : i32
    return %arg0, %c0_i32, %c0_i32_0 : i32, i32, i32
  }
  func.func @transform_5(%arg0: i32) -> (i32, i32, i32) {
    %c0_i32 = arith.constant 0 : i32
    %c0_i32_0 = arith.constant 0 : i32
    %c0_i32_1 = arith.constant 0 : i32
    %c0_i32_2 = arith.constant 0 : i32
    return %c0_i32, %c0_i32_0, %c0_i32_1 : i32, i32, i32
  }
}

module attributes {stable_mosaic.version = 11 : i64} {
  func.func @_stage3_kernel(%arg0: i32, %arg1: memref<2x16x128xbf16, #tpu.memory_space<vmem>>, %arg2: memref<2x16x64xbf16, #tpu.memory_space<vmem>>, %arg3: memref<1x128xf32, #tpu.memory_space<vmem>>, %arg4: memref<1x128xf32, #tpu.memory_space<vmem>>, %arg5: memref<64x128xbf16, #tpu.memory_space<vmem>>, %arg6: memref<1x128xf32, #tpu.memory_space<vmem>>, %arg7: memref<2x16x128xf32, #tpu.memory_space<vmem>>) attributes {dimension_semantics = [#tpu.dimension_semantics<parallel>], iteration_bounds = array<i64: 1>, scalar_prefetch = 0 : i64, scratch_operands = 0 : i64, tpu.core_type = #tpu.core_type<tc>, window_params = [{transform_indices = @transform_0, window_bounds = array<i64: 2, 16, 128>}, {transform_indices = @transform_1, window_bounds = array<i64: 2, 16, 64>}, {pipeline_mode = #tpu.pipeline_mode<synchronous>, transform_indices = @transform_2, window_bounds = array<i64: 1, 128>}, {pipeline_mode = #tpu.pipeline_mode<synchronous>, transform_indices = @transform_3, window_bounds = array<i64: 1, 128>}, {pipeline_mode = #tpu.pipeline_mode<synchronous>, transform_indices = @transform_4, window_bounds = array<i64: 64, 128>}, {pipeline_mode = #tpu.pipeline_mode<synchronous>, transform_indices = @transform_5, window_bounds = array<i64: 1, 128>}, {transform_indices = @transform_6, window_bounds = array<i64: 2, 16, 128>}]} {
    %c0 = arith.constant 0 : index
    %c0_0 = arith.constant 0 : index
    %c0_1 = arith.constant 0 : index
    %0 = vector.load %arg1[%c0, %c0_0, %c0_1] : memref<2x16x128xbf16, #tpu.memory_space<vmem>>, vector<2x16x128xbf16>
    %1 = arith.extf %0 : vector<2x16x128xbf16> to vector<2x16x128xf32>
    %2 = vector.shape_cast %1 : vector<2x16x128xf32> to vector<32x128xf32>
    %c0_2 = arith.constant 0 : index
    %c0_3 = arith.constant 0 : index
    %3 = vector.load %arg3[%c0_2, %c0_3] : memref<1x128xf32, #tpu.memory_space<vmem>>, vector<1x128xf32>
    %4 = vector.broadcast %3 : vector<1x128xf32> to vector<32x128xf32>
    %5 = arith.mulf %2, %4 : vector<32x128xf32>
    %c0_4 = arith.constant 0 : index
    %c0_5 = arith.constant 0 : index
    %6 = vector.load %arg4[%c0_4, %c0_5] : memref<1x128xf32, #tpu.memory_space<vmem>>, vector<1x128xf32>
    %7 = vector.broadcast %6 : vector<1x128xf32> to vector<32x128xf32>
    %8 = arith.addf %5, %7 : vector<32x128xf32>
    %c0_6 = arith.constant 0 : index
    %c0_7 = arith.constant 0 : index
    %c0_8 = arith.constant 0 : index
    %9 = vector.load %arg2[%c0_6, %c0_7, %c0_8] : memref<2x16x64xbf16, #tpu.memory_space<vmem>>, vector<2x16x64xbf16>
    %10 = vector.shape_cast %9 : vector<2x16x64xbf16> to vector<32x64xbf16>
    %c0_9 = arith.constant 0 : index
    %c0_10 = arith.constant 0 : index
    %11 = vector.load %arg5[%c0_9, %c0_10] : memref<64x128xbf16, #tpu.memory_space<vmem>>, vector<64x128xbf16>
    %cst = arith.constant dense<0.000000e+00> : vector<32x128xf32>
    %12 = tpu.matmul %10, %11, %cst {dimension_numbers = #tpu.dot_dimension_numbers<[1], [0], [0], [1], [0, 0, 1, 1], [], []>} : vector<32x64xbf16>, vector<64x128xbf16>, vector<32x128xf32> -> vector<32x128xf32>
    %c0_11 = arith.constant 0 : index
    %c0_12 = arith.constant 0 : index
    %13 = vector.load %arg6[%c0_11, %c0_12] : memref<1x128xf32, #tpu.memory_space<vmem>>, vector<1x128xf32>
    %14 = vector.broadcast %13 : vector<1x128xf32> to vector<32x128xf32>
    %15 = arith.addf %12, %14 : vector<32x128xf32>
    %16 = arith.addf %8, %15 : vector<32x128xf32>
    %cst_13 = arith.constant 0.000000e+00 : f32
    %17 = vector.broadcast %cst_13 : f32 to vector<32x128xf32>
    %18 = arith.maximumf %16, %17 : vector<32x128xf32>
    %19 = vector.shape_cast %18 : vector<32x128xf32> to vector<2x16x128xf32>
    %c0_14 = arith.constant 0 : index
    %c0_15 = arith.constant 0 : index
    %c0_16 = arith.constant 0 : index
    %20 = vector.load %arg7[%c0_14, %c0_15, %c0_16] : memref<2x16x128xf32, #tpu.memory_space<vmem>>, vector<2x16x128xf32>
    tpu.vector_store %arg7[%c0_14, %c0_15, %c0_16], %19 {strides = array<i32>} : memref<2x16x128xf32, #tpu.memory_space<vmem>>, vector<2x16x128xf32>,
    return
  }
  func.func @transform_0(%arg0: i32) -> (i32, i32, i32) {
    %c0_i32 = arith.constant 0 : i32
    %c0_i32_0 = arith.constant 0 : i32
    %c0_i32_1 = arith.constant 0 : i32
    return %arg0, %c0_i32, %c0_i32_0 : i32, i32, i32
  }
  func.func @transform_1(%arg0: i32) -> (i32, i32, i32) {
    %c0_i32 = arith.constant 0 : i32
    %c0_i32_0 = arith.constant 0 : i32
    %c0_i32_1 = arith.constant 0 : i32
    return %arg0, %c0_i32, %c0_i32_0 : i32, i32, i32
  }
  func.func @transform_2(%arg0: i32) -> (i32, i32) {
    %c0_i32 = arith.constant 0 : i32
    %c0_i32_0 = arith.constant 0 : i32
    %c0_i32_1 = arith.constant 0 : i32
    return %c0_i32, %c0_i32_0 : i32, i32
  }
  func.func @transform_3(%arg0: i32) -> (i32, i32) {
    %c0_i32 = arith.constant 0 : i32
    %c0_i32_0 = arith.constant 0 : i32
    %c0_i32_1 = arith.constant 0 : i32
    return %c0_i32, %c0_i32_0 : i32, i32
  }
  func.func @transform_4(%arg0: i32) -> (i32, i32) {
    %c0_i32 = arith.constant 0 : i32
    %c0_i32_0 = arith.constant 0 : i32
    %c0_i32_1 = arith.constant 0 : i32
    return %c0_i32, %c0_i32_0 : i32, i32
  }
  func.func @transform_5(%arg0: i32) -> (i32, i32) {
    %c0_i32 = arith.constant 0 : i32
    %c0_i32_0 = arith.constant 0 : i32
    %c0_i32_1 = arith.constant 0 : i32
    return %c0_i32, %c0_i32_0 : i32, i32
  }
  func.func @transform_6(%arg0: i32) -> (i32, i32, i32) {
    %c0_i32 = arith.constant 0 : i32
    %c0_i32_0 = arith.constant 0 : i32
    %c0_i32_1 = arith.constant 0 : i32
    return %arg0, %c0_i32, %c0_i32_0 : i32, i32, i32
  }
}

</mosaic_0001>

<bundles_post_ra>
// kernel: dct_residual_block.3
= control target key start
LH: loop header
LB: loop body
LE: loop exit
PB: predicated region body
PF: predicated region fallthrough
CT: control target
= control target key end

     0   :  { %vm19_vm0 = vcmask 516096   ;;  %vm20_vm1 = vsmask.f32 256  ;;  %v22_v3 = vld [vmem:[#allocation2] sm:$0x1]  ;;  %vm30_vm3 = vcmask 517121   ;;  %s749_s1 = inlined_call_operand.vmem [shape: bf16[3,64,128], index: 1, kind: input, shape index: {}]   ;;  %s750_s0 = inlined_call_operand.vmem [shape: bf16[2,16,64], index: 0, kind: input, shape index: {}]   ;;  %s751_s3 = inlined_call_operand.vmem [shape: f32[1,2,128], index: 3, kind: output, shape index: {1}]   ;;  %s752_s2 = inlined_call_operand.vmem [shape: bf16[2,16,128], index: 2, kind: output, shape index: {0}]  }
   0x1   :  { %v556_v0 = vld [vmem:[%s749_s1 + $0x18] sm:$0xff]  ;;  %vm25_vm2 = vsmask.f32 7938  ;;  %v555_v4 = vld [vmem:[%s749_s1 + $0x10] sm:$0xff]  ;;  %vm31_vm4 = vsmask.f32 1280  ;;  %vm623_vm5 = vmand %vm19_vm0, %vm20_vm1 }
   0x2   :  { %v564_v1 = vld [vmem:[%s749_s1 + $0x58] sm:$0xff]  ;;  %274 = vmatpush.bf16.msra.mxu1 %v556_v0  ;;  %v563_v5 = vld [vmem:[%s749_s1 + $0x50] sm:$0xff]  ;;  %v27_v8 = vld [vmem:[#allocation2 + $0x8] sm:$0x1]  ;;  %vm36_vm6 = vsmask.f32 7942 }
   0x3   :  { %v560_v2 = vld [vmem:[%s749_s1 + $0x38] sm:$0xff]  ;;  %349 = vmatpush.bf16.msra.mxu2 %v564_v1  ;;  %v559_v6 = vld [vmem:[%s749_s1 + $0x30] sm:$0xff]  ;;  %vm44_vm7 = vsmask.f32 4368  ;;  %v554_v9 = vld [vmem:[%s749_s1 + $0x8] sm:$0xff]  ;;  %v23_v11 = vsel %vm623_vm5, 0, %v22_v3 }
   0x4   :  { %217 = vmatpush.bf16.msra.mxu0 %v560_v2  ;;  %577 = vmatpush.bf16.msra.mxu3 %v560_v2  ;;  %v562_v10 = vld [vmem:[%s749_s1 + $0x48] sm:$0xff]  ;;  %vm26_vm8 = vmand %vm19_vm0, %vm25_vm2  ;;  %v41_v13 = vld [vmem:[%s750_s0] sm:$0xf]  ;;  %vm66_vm9 = vcmask 519168   ;;  %24 = vst [vmem:[#allocation2] sm:$0x1] %v23_v11 }
   0x5   :  { %v33_v12 = vld [vmem:[#allocation2 + $0x8] sm:$0x2]  ;;  %v28_v14 = vsel %vm26_vm8, 0, %v27_v8  ;;  %vm32_vm10 = vmand %vm30_vm3, %vm31_vm4  ;;  %v42_v15 = vld [vmem:[%s750_s0 + $0x4] sm:$0xf]  ;;  %v47_v16 = vshrl.u32 %v41_v13, 16 }
   0x6   :  { %275 = vmatpush.bf16.msra.mxu1 %v555_v4  ;;  %29 = vst [vmem:[#allocation2 + $0x8] sm:$0x1] %v28_v14  ;;  %v34_v17 = vsel %vm32_vm10, 0, %v33_v12  ;;  %v50_v18 = vshll.u32 %v41_v13, 16  ;;  %v55_v19 = vshrl.u32 %v42_v15, 16  ;;  %v58_v20 = vshll.u32 %v42_v15, 16  ;;  %vm653_vm11 = vmand %vm30_vm3, %vm36_vm6 }
   0x7   :  { %350 = vmatpush.bf16.msra.mxu2 %v563_v5  ;;  %v558_v21 = vld [vmem:[%s749_s1 + $0x28] sm:$0xff]  ;;  %35 = vst [vmem:[#allocation2 + $0x8] sm:$0x2] %v34_v17  ;;  %v49_v22 = vrot.slane %v47_v16, 7  ;;  %vm107_vm12 = vcmask 519169   ;;  %vm662_vm13 = vmor %vm20_vm1, %vm44_vm7  ;;  %v553_v34 = vld [vmem:[%s749_s1] sm:$0xff] }
   0x8   :  { %218 = vmatpush.bf16.msra.mxu0 %v559_v6  ;;  %578 = vmatpush.bf16.msra.mxu3 %v559_v6  ;;  %v470_v23 = vld [vmem:[%s750_s0 + $0x8] sm:$0xf]  ;;  %v57_v25 = vrot.slane %v55_v19, 7  ;;  %v471_v26 = vld [vmem:[%s750_s0 + $0xc] sm:$0xf]  ;;  %vm671_vm14 = vmand %vm66_vm9, %vm25_vm2  ;;  %vm114_vm2 = vcmask 517120  }
   0x9   :  { %v86_v27 = vshrl.u32 %v470_v23, 16  ;;  %v52_v29 = vor.u32 %v50_v18, %v49_v22  ;;  %v53_v30 = vrot.slane %v49_v22, 4  ;;  %v89_v31 = vshll.u32 %v470_v23, 16  ;;  %v38_v33 = vld [vmem:[#allocation2 + $0x10] sm:$0x2]  ;;  %v561_v40 = vld [vmem:[%s749_s1 + $0x40] sm:$0xff]  ;;  %vm687_vm0 = vmand %vm107_vm12, %vm36_vm6 }
   0xa   :  { %v95_v32 = vshrl.u32 %v471_v26, 16  ;;  %276 = vmatpush.bf16.msra.mxu1 %v554_v9  ;;  %v60_v35 = vor.u32 %v58_v20, %v57_v25  ;;  %v62_v36 = vrot.slane %v57_v25, 4  ;;  %v98_v39 = vshll.u32 %v471_v26, 16  ;;  %v557_v43 = vld [vmem:[%s749_s1 + $0x20] sm:$0xff]  ;;  %vm115_vm3 = vmand %vm114_vm2, %vm31_vm4 }
   0xb   :  { %351 = vmatpush.bf16.msra.mxu2 %v562_v10  ;;  %v88_v38 = vrot.slane %v86_v27, 6  ;;  %vm83_vm15 = vsmask.f32 5392  ;;  %v91_v41 = vrot.slane %v89_v31, 7  ;;  %v39_v44 = vsel %vm653_vm11, 0, %v38_v33 }
   0xc   :  { %219 = vmatpush.bf16.msra.mxu0 %v558_v21  ;;  %v97_v42 = vrot.slane %v95_v32, 6  ;;  %579 = vmatpush.bf16.msra.mxu3 %v558_v21  ;;  %v61_v45 = vsel %vm662_vm13, %v53_v30, %v60_v35  ;;  %v69_v46 = vld [vmem:[#allocation2] sm:$0xf]  ;;  %v100_v47 = vrot.slane %v98_v39, 7  ;;  %40 = vst [vmem:[#allocation2 + $0x10] sm:$0x2] %v39_v44  ;;  %vm84_vm1 = vmor %vm31_vm4, %vm83_vm15 }
   0xd   :  { %v70_v49 = vsel %vm671_vm14, %v52_v29, %v69_v46  ;;  %73 = vst.msk [vmem:[#allocation2 + $0x4] sm:$0xf] %vm66_vm9, %v61_v45  ;;  %v76_v50 = vld [vmem:[#allocation2 + $0x8] sm:$0x1]  ;;  %v92_v51 = vor.u32 %v91_v41, %v88_v38  ;;  %vm306_vm6 = vcmask 1046528   ;;  %v582_v31 = vmov 0.0  }
   0xe   :  { %277 = vmatpush.bf16.msra.mxu1 %v553_v34  ;;  %71 = vst [vmem:[#allocation2] sm:$0xf] %v70_v49  ;;  %v77_v52 = vsel %vm623_vm5, %v62_v36, %v76_v50  ;;  %v101_v53 = vor.u32 %v100_v47, %v97_v42  ;;  %v110_v54 = vld [vmem:[#allocation2 + $0x8] sm:$0xe]  ;;  %vm203_vm5 = vcmask 523264   ;;  %vm401_vm7 = vcmask 1042432  }
   0xf   :  { %352 = vmatpush.bf16.msra.mxu2 %v561_v40  ;;  %78 = vst [vmem:[#allocation2 + $0x8] sm:$0x1] %v77_v52  ;;  %v93_v55 = vrot.slane %v92_v51, 4  ;;  %v111_v56 = vsel %vm687_vm0, %v92_v51, %v110_v54  ;;  %vm155_vm4 = vsmask.f32 7424  ;;  %vm402_vm8 = vcmask 1046532  }
  0x10   :  { %220 = vmatpush.bf16.msra.mxu0 %v557_v43  ;;  %580 = vmatpush.bf16.msra.mxu3 %v557_v43  ;;  %v103_v57 = vrot.slane %v101_v53, 4  ;;  %112 = vst [vmem:[#allocation2 + $0x8] sm:$0xe] %v111_v56  ;;  %vm419_vm10 = vcmask 1045504  }
  0x11   :  { %v102_v58 = vsel %vm84_vm1, %v93_v55, %v101_v53  ;;  %18 = vst [vmem:[%s751_s3] sm:$0x3] %v582_v31 }
  0x12   :  { %113 = vst.msk [vmem:[#allocation2 + $0xc] sm:$0xf] %vm66_vm9, %v102_v58  ;;  %vm719_vm9 = vmor %vm401_vm7, %vm402_vm8 }
  0x13   :  { %v116_v59 = vld [vmem:[#allocation2 + $0x10] sm:$0x3] }
  0x14   :  { %v574_v60 = vld [vmem:[#allocation2] sm:$0xf0]  ;;  %v117_v61 = vsel %vm115_vm3, %v103_v57, %v116_v59 }
  0x15   :  { %v566_v62 = vld [vmem:[#allocation2] sm:$0xff]   ;;  %118 = vst [vmem:[#allocation2 + $0x10] sm:$0x3] %v117_v61 }
  0x16   :  { %v575_v63 = vld [vmem:[#allocation2] sm:$0xe]  ;;  %v159_v0 = vshll.u32 %v566_v62, 16  ;;  %519 = vmatmul.msk.bf16.vlgmr.msra.gmra.mxu1 %vm203_vm5, %v566_v62  ;;  %v157_v2 = vshrl.u32 %v566_v62, 16 }
  0x17   :  { %v576_v1 = vor.u32 %v575_v63, %v574_v60 }
  0x18   :  { %v161_v3 = vrot.slane %v159_v0, 1 }
  0x19   :  { %v552_v4 = vld [vmem:[#allocation2 + $0x8] sm:$0xff]  ;;  %v307_v5 = vrot.slane %v576_v1, 1 }
  0x1a   :  { %v162_v6 = vor.u32 %v161_v3, %v157_v2  ;;  %v308_v7 = vrot.slane %v552_v4, 1  ;;  %v164_v8 = vshll.u32 %v552_v4, 16  ;;  %v168_v13 = vshrl.u32 %v552_v4, 16 }
  0x1c   :  { %v132_v9 = vld [vmem:[#allocation2 + $0x10] sm:$0x3]  ;;  %v309_v10 = vsel %vm306_vm6, %v307_v5, %v308_v7  ;;  %v166_v11 = vrot.slane %v164_v8, 1 }
  0x1d   :  { %v151_v12 = vunpack.c.l.b16 %v132_v9  ;;  %546 = vmatmul.msk.bf16.vlgmr.msra.gmra.mxu2 %vm203_vm5, %v309_v10  ;;  %v123_v22 = vld [vmem:[#allocation2 + $0x10] sm:$0x1] }
  0x1e   :  { %v167_v14 = vsel %vm155_vm4, %v162_v6, %v166_v11  ;;  %v170_v16 = vor.u32 %v168_v13, %v166_v11  ;;  %v237_v24 = vunpack.c.l.b16 %v123_v22 }
  0x1f   :  { %v154_v15 = vpack.c.b16 %v151_v12, %v151_v12  ;;  %500 = vmatmul.msk.bf16.vlgmr.msra.gmra.mxu0 %vm203_vm5, %v167_v14 }
  0x20   :  { %v238_v26 = vpack.c.b16 %v237_v24, %v237_v24 }
  0x21   :  { %v172_v17 = vshll.u32 %v154_v15, 16  ;;  %v310_v20 = vrot.slane %v154_v15, 1  ;;  %v176_v23 = vshrl.u32 %v154_v15, 16 }
  0x23   :  { %v174_v18 = vrot.slane %v172_v17, 1  ;;  %v311_v21 = vsel %vm306_vm6, %v308_v7, %v310_v20 }
  0x25   :  { %v175_v19 = vsel %vm155_vm4, %v170_v16, %v174_v18  ;;  %v178_v25 = vor.u32 %v176_v23, %v174_v18 }
  0x26   :  { %501 = vmatmul.msk.bf16.vlgmr.msra.gmra.mxu3 %vm203_vm5, %v175_v19  ;;  %520 = vmatmul.msk.bf16.gmra.mxu1 %vm203_vm5, %v552_v4 }
  0x2d   :  { %547 = vmatmul.msk.bf16.gmra.mxu2 %vm203_vm5, %v311_v21 }
  0x36   :  { %502 = vmatmul.msk.bf16.gmra.mxu3 %vm203_vm5, %v178_v25  ;;  %521 = vmatmul.msk.bf16.gmra.mxu1 %vm203_vm5, %v238_v26 }
  0x3d   :  { %548 = vmatmul.msk.bf16.gmra.mxu2 %vm203_vm5, %v310_v20 }
  0x93   :  { %v279_v27 = vpop.f32.mrf.mxu1 }
  0x9b   :  { %v281_v28 = vpop.f32.mrf.mxu1 }
  0x9c   :  { %v222_v29 = vpop.f32.mrf.mxu0 }
  0x9d   :  { %v280_v34 = vadd.f32 %v279_v27, %v222_v29 }
  0xa0   :  { %v354_v30 = vpop.f32.mrf.mxu2 }
  0xa1   :  { %v368_v38 = vadd.f32 %v354_v30, %v280_v34 }
  0xa3   :  { %v284_v32 = vpop.f32.mrf.mxu1  ;;  %v385_v53 = vmul.f32 %v368_v38, %v368_v38 }
  0xa4   :  { %v224_v33 = vpop.f32.mrf.mxu0 }
  0xa5   :  { %v282_v35 = vadd.f32 %v281_v28, %v224_v33 }
  0xa8   :  { %v356_v37 = vpop.f32.mrf.mxu2 }
  0xa9   :  { %v227_v36 = vpop.f32.mrf.mxu3  ;;  %v369_v39 = vadd.f32 %v356_v37, %v282_v35 }
  0xaa   :  { %v285_v44 = vadd.f32 %v284_v32, %v227_v36 }
  0xab   :  { %v286_v40 = vpop.f32.mrf.mxu1  ;;  %v572_v41 = vpack.c.bf16 %v369_v39, %v368_v38  ;;  %v386_v48 = vmul.f32 %v369_v39, %v369_v39  ;;  %v377_v54 = vadd.f32 %v369_v39, %v368_v38 }
  0xad   :  { %573 = vst [vmem:[%s752_s2] sm:$0xff] %v572_v41   ;;  %v387_v57 = vadd.f32 %v386_v48, %v385_v53  ;;  %v378_v62 = vrot.slane %v377_v54, 4  ;;  %v459_v48 = vld [vmem:[%s751_s3 + $0x1] sm:$0x1] }
  0xaf   :  { %v388_v1 = vrot.slane %v387_v57, 4  ;;  %v379_v7 = vadd.f32 %v378_v62, %v377_v54 }
  0xb0   :  { %v359_v43 = vpop.f32.mrf.mxu2 }
  0xb1   :  { %v229_v42 = vpop.f32.mrf.mxu3  ;;  %v370_v46 = vadd.f32 %v359_v43, %v285_v44  ;;  %v389_v13 = vadd.f32 %v388_v1, %v387_v57  ;;  %v380_v20 = vrot.slane %v379_v7, 2  ;;  %v456_v44 = vld [vmem:[%s751_s3] sm:$0x1] }
  0xb2   :  { %v287_v47 = vadd.f32 %v286_v40, %v229_v42 }
  0xb3   :  { %v289_v45 = vpop.f32.mrf.mxu1  ;;  %v395_v51 = vpack.c.bf16 %v370_v46, %v370_v46  ;;  %v435_v2 = vmul.f32 %v370_v46, %v370_v46  ;;  %v420_v8 = vrot.slane %v370_v46, 2  ;;  %v390_v25 = vrot.slane %v389_v13, 2 }
  0xb4   :  { %v381_v29 = vadd.f32 %v380_v20, %v379_v7 }
  0xb5   :  { %v549_v59 = vrot.slane %v395_v51, 9  ;;  %v441_v14 = vrot.slane %v435_v2, 2  ;;  %v391_v32 = vadd.f32 %v390_v25, %v389_v13 }
  0xb6   :  { %v382_v35 = vrot.slane %v381_v29, 1 }
  0xb7   :  { %v392_v38 = vrot.slane %v391_v32, 1 }
  0xb8   :  { %v361_v50 = vpop.f32.mrf.mxu2  ;;  %v383_v41 = vadd.f32 %v382_v35, %v381_v29 }
  0xb9   :  { %v232_v49 = vpop.f32.mrf.mxu3  ;;  %v371_v52 = vadd.f32 %v361_v50, %v287_v47 }
  0xba   :  { %v290_v60 = vadd.f32 %v289_v45, %v232_v49  ;;  %v393_v45 = vadd.f32 %v392_v38, %v391_v32 }
  0xbb   :  { %v291_v55 = vpop.f32.mrf.mxu1  ;;  %v396_v56 = vpack.c.bf16 %v371_v52, %v371_v52  ;;  %v436_v0 = vmul.f32 %v371_v52, %v371_v52  ;;  %v421_v3 = vrot.slane %v371_v52, 2 }
  0xbd   :  { %v406_v61 = vrot.slane %v396_v56, 5  ;;  %v442_v9 = vrot.slane %v436_v0, 2  ;;  %v422_v15 = vsel %vm419_vm10, %v420_v8, %v421_v3 }
  0xbf   :  { %v407_v63 = vsel %vm719_vm9, %v549_v59, %v406_v61  ;;  %v408_v16 = vrot.slane %v406_v61, 4  ;;  %v443_v22 = vsel %vm419_vm10, %v441_v14, %v442_v9 }
  0xc0   :  { %550 = vst [vmem:[%s752_s2 + $0x8] sm:$0xf] %v407_v63  ;;  %v364_v5 = vpop.f32.mrf.mxu2 }
  0xc1   :  { %v234_v4 = vpop.f32.mrf.mxu3  ;;  %v372_v6 = vadd.f32 %v364_v5, %v290_v60 }
  0xc3   :  { %v397_v10 = vpack.c.bf16 %v372_v6, %v372_v6  ;;  %v423_v11 = vrot.slane %v372_v6, 2  ;;  %v437_v12 = vmul.f32 %v372_v6, %v372_v6 }
  0xc5   :  { %v409_v17 = vrot.slane %v397_v10, 5  ;;  %v424_v18 = vsel %vm419_vm10, %v421_v3, %v423_v11  ;;  %v444_v19 = vrot.slane %v437_v12, 2 }
  0xc6   :  { %v427_v21 = vadd.f32 %v424_v18, %v422_v15 }
  0xc7   :  { %v410_v23 = vsel %vm719_vm9, %v408_v16, %v409_v17  ;;  %v445_v24 = vsel %vm419_vm10, %v442_v9, %v444_v19 }
  0xc8   :  { %551 = vst [vmem:[%s752_s2 + $0xc] sm:$0xf] %v410_v23  ;;  %v428_v26 = vrot.slane %v427_v21, 4  ;;  %v448_v27 = vadd.f32 %v445_v24, %v443_v22  ;;  %v366_v28 = vpop.f32.mrf.mxu2 }
  0xca   :  { %v429_v30 = vadd.f32 %v428_v26, %v427_v21  ;;  %v449_v31 = vrot.slane %v448_v27, 4 }
  0xcc   :  { %v430_v33 = vrot.slane %v429_v30, 2  ;;  %v450_v34 = vadd.f32 %v449_v31, %v448_v27 }
  0xce   :  { %v431_v36 = vadd.f32 %v430_v33, %v429_v30  ;;  %v451_v37 = vrot.slane %v450_v34, 2 }
  0xd0   :  { %v432_v39 = vrot.slane %v431_v36, 1  ;;  %v452_v40 = vadd.f32 %v451_v37, %v450_v34 }
  0xd2   :  { %v433_v42 = vadd.f32 %v432_v39, %v431_v36  ;;  %v453_v43 = vrot.slane %v452_v40, 1 }
  0xd4   :  { %v434_v46 = vadd.f32 %v433_v42, %v383_v41  ;;  %v454_v47 = vadd.f32 %v453_v43, %v452_v40 }
  0xd6   :  { %v455_v49 = vadd.f32 %v454_v47, %v393_v45  ;;  %v457_v50 = vadd.f32 %v456_v44, %v434_v46 }
  0xd8   :  { %458 = vst [vmem:[%s751_s3] sm:$0x1] %v457_v50  ;;  %v460_v51 = vadd.f32 %v459_v48, %v455_v49 }
  0xda   :  { %461 = vst [vmem:[%s751_s3 + $0x1] sm:$0x1] %v460_v51 }

// kernel: squeeze.6
= control target key start
LH: loop header
LB: loop body
LE: loop exit
PB: predicated region body
PF: predicated region fallthrough
CT: control target
= control target key end

     0   :  { %s130_s8 = smov 120   ;;  %s131_s9 = smov 88   ;;  %vm7_vm0 = vcmask 64512   ;;  %s221_s0 = inlined_call_operand.vmem [shape: f32[128], index: 0, kind: input, shape index: {}]   ;;  %s222_s1 = inlined_call_operand.vmem [shape: f32[16,8], index: 1, kind: output, shape index: {}]  }
   0x1   :  { %v4_v0 = vld [vmem:[%s221_s0] sm:$0x1]  ;;  %s129_s0 = smov 104   ;;  %s132_s10 = smov 96  }
   0x2   :  { %5 = vst [vmem:[#allocation0] sm:$0x1] %v4_v0  ;;  %s133_s11 = smov 112   ;;  %s134_s12 = smov 80  }
   0x3   :  { %s135_s13 = smov 64   ;;  %s136_s14 = smov 72  }
   0x4   :  { %s137_s15 = smov 56   ;;  %s138_s16 = smov 40  }
   0x5   :  { %s139_s17 = smov 48   ;;  %s140_s18 = smov 32  }
   0x6   :  { %s141_s19 = smov 16   ;;  %s142_s20 = smov 24  }
   0x7   :  { %s143_s21 = smov 8  }
   0x9   :  { %v21_v1 = vld [vmem:[#allocation0] sm:$0x1]  }
   0xa   :  { %v9_v2 = vld [vmem:[#allocation0] sm:$0x1]   ;;  %22 = vrot.lane.b32.xlu1 %v21_v1, %s129_s0 }
   0xb   :  { %10 = vrot.lane.b32.xlu0 %v9_v2, %s130_s8  ;;  %v33_v3 = vld [vmem:[#allocation0] sm:$0x1]  }
   0xc   :  { %34 = vrot.lane.b32.xlu2 %v33_v3, %s131_s9  ;;  %v27_v4 = vld [vmem:[#allocation0] sm:$0x1]  }
   0xd   :  { %v15_v5 = vld [vmem:[#allocation0] sm:$0x1]  }
   0xe   :  { %v39_v6 = vld [vmem:[#allocation0] sm:$0x1]  }
   0xf   :  { %v51_v7 = vld [vmem:[#allocation0] sm:$0x1]  }
  0x10   :  { %v45_v8 = vld [vmem:[#allocation0] sm:$0x1]  }
  0x11   :  { %v57_v9 = vld [vmem:[#allocation0] sm:$0x1]  }
  0x12   :  { %28 = vrot.lane.b32.xlu1 %v27_v4, %s132_s10  ;;  %v69_v10 = vld [vmem:[#allocation0] sm:$0x1]  }
  0x13   :  { %16 = vrot.lane.b32.xlu0 %v15_v5, %s133_s11  ;;  %v63_v11 = vld [vmem:[#allocation0] sm:$0x1]  }
  0x14   :  { %40 = vrot.lane.b32.xlu2 %v39_v6, %s134_s12  ;;  %v75_v12 = vld [vmem:[#allocation0] sm:$0x1]  }
  0x15   :  { %v87_v13 = vld [vmem:[#allocation0] sm:$0x1]  }
  0x16   :  { %v81_v14 = vld [vmem:[#allocation0] sm:$0x1]  }
  0x17   :  { %v93_v15 = vld [vmem:[#allocation0] sm:$0x1]  }
  0x18   :  { %v6_v21 = vld [vmem:[#allocation0] sm:$0x1]  }
  0x19   :  { %8 = vst.msk [vmem:[%s222_s1] sm:$0x1] %vm7_vm0, %v6_v21  }
  0x1a   :  { %52 = vrot.lane.b32.xlu1 %v51_v7, %s135_s13 }
  0x1b   :  { %46 = vrot.lane.b32.xlu0 %v45_v8, %s136_s14 }
  0x1c   :  { %58 = vrot.lane.b32.xlu2 %v57_v9, %s137_s15 }
  0x22   :  { %70 = vrot.lane.b32.xlu1 %v69_v10, %s138_s16 }
  0x23   :  { %64 = vrot.lane.b32.xlu0 %v63_v11, %s139_s17 }
  0x24   :  { %76 = vrot.lane.b32.xlu2 %v75_v12, %s140_s18 }
  0x2a   :  { %88 = vrot.lane.b32.xlu1 %v87_v13, %s141_s19 }
  0x2b   :  { %82 = vrot.lane.b32.xlu0 %v81_v14, %s142_s20 }
  0x2c   :  { %94 = vrot.lane.b32.xlu2 %v93_v15, %s143_s21 }
  0x66   :  { %v35_v16 = vpop.permute.xlu2 %34  }
  0x67   :  { %103 = vst.msk [vmem:[%s222_s1 + $0x5] sm:$0x1] %vm7_vm0, %v35_v16  }
  0x6e   :  { %v41_v17 = vpop.permute.xlu2 %40  }
  0x6f   :  { %104 = vst.msk [vmem:[%s222_s1 + $0x6] sm:$0x1] %vm7_vm0, %v41_v17  }
  0x76   :  { %v59_v18 = vpop.permute.xlu2 %58  }
  0x77   :  { %107 = vst.msk [vmem:[%s222_s1 + $0x9] sm:$0x1] %vm7_vm0, %v59_v18  }
  0x7c   :  { %v23_v19 = vpop.permute.xlu1 %22  }
  0x7d   :  { %v11_v20 = vpop.permute.xlu0 %10   ;;  %101 = vst.msk [vmem:[%s222_s1 + $0x3] sm:$0x1] %vm7_vm0, %v23_v19  }
  0x7e   :  { %99 = vst.msk [vmem:[%s222_s1 + $0x1] sm:$0x1] %vm7_vm0, %v11_v20   ;;  %v77_v22 = vpop.permute.xlu2 %76  }
  0x7f   :  { %110 = vst.msk [vmem:[%s222_s1 + $0xc] sm:$0x1] %vm7_vm0, %v77_v22  }
  0x84   :  { %v29_v23 = vpop.permute.xlu1 %28  }
  0x85   :  { %v17_v24 = vpop.permute.xlu0 %16   ;;  %102 = vst.msk [vmem:[%s222_s1 + $0x4] sm:$0x1] %vm7_vm0, %v29_v23  }
  0x86   :  { %100 = vst.msk [vmem:[%s222_s1 + $0x2] sm:$0x1] %vm7_vm0, %v17_v24   ;;  %v95_v25 = vpop.permute.xlu2 %94  }
  0x87   :  { %113 = vst.msk [vmem:[%s222_s1 + $0xf] sm:$0x1] %vm7_vm0, %v95_v25  }
  0x8c   :  { %v53_v26 = vpop.permute.xlu1 %52  }
  0x8d   :  { %v47_v27 = vpop.permute.xlu0 %46   ;;  %106 = vst.msk [vmem:[%s222_s1 + $0x8] sm:$0x1] %vm7_vm0, %v53_v26  }
  0x8e   :  { %105 = vst.msk [vmem:[%s222_s1 + $0x7] sm:$0x1] %vm7_vm0, %v47_v27  }
  0x94   :  { %v71_v28 = vpop.permute.xlu1 %70  }
  0x95   :  { %v65_v29 = vpop.permute.xlu0 %64   ;;  %109 = vst.msk [vmem:[%s222_s1 + $0xb] sm:$0x1] %vm7_vm0, %v71_v28  }
  0x96   :  { %108 = vst.msk [vmem:[%s222_s1 + $0xa] sm:$0x1] %vm7_vm0, %v65_v29  }
  0x9c   :  { %v89_v30 = vpop.permute.xlu1 %88  }
  0x9d   :  { %v83_v31 = vpop.permute.xlu0 %82   ;;  %112 = vst.msk [vmem:[%s222_s1 + $0xe] sm:$0x1] %vm7_vm0, %v89_v30  }
  0x9e   :  { %111 = vst.msk [vmem:[%s222_s1 + $0xd] sm:$0x1] %vm7_vm0, %v83_v31  }

// kernel: tile.33
= control target key start
LH: loop header
LB: loop body
LE: loop exit
PB: predicated region body
PF: predicated region fallthrough
CT: control target
= control target key end

     0   :  { %s28_s0 = inlined_call_operand.vmem [shape: f32[8], index: 0, kind: input, shape index: {}]   ;;  %s29_s1 = inlined_call_operand.vmem [shape: f32[16,8], index: 1, kind: output, shape index: {}]  }
   0x1   :  { %v4_v0 = vld [vmem:[%s28_s0] ss:$0 sm:$0xff] }
   0x2   :  { %5 = vst [vmem:[%s29_s1] sm:$0xff] %v4_v0 }
   0x3   :  { %8 = vst [vmem:[%s29_s1 + $0x8] sm:$0xff] %v4_v0 }

// kernel: tile.34
= control target key start
LH: loop header
LB: loop body
LE: loop exit
PB: predicated region body
PF: predicated region fallthrough
CT: control target
= control target key end

     0   :  { %s131_s10 = smov 120   ;;  %s132_s11 = smov 104   ;;  %vm3_vm0 = vcmask 64512   ;;  %vm9_vm1 = vcmask 1048512   ;;  %vm15_vm2 = vcmask 982912   ;;  %vm21_vm3 = vcmask 917312   ;;  %s207_s0 = inlined_call_operand.vmem [shape: f32[16,8], index: 0, kind: input, shape index: {}]   ;;  %s208_s1 = inlined_call_operand.vmem [shape: f32[1,128], index: 1, kind: output, shape index: {}]  }
   0x1   :  { %v101_v0 = vld [vmem:[%s207_s0 + $0xf] sm:$0x1]   ;;  %v103_v1 = vld [vmem:[%s207_s0 + $0xd] sm:$0x1]   ;;  %v105_v2 = vld [vmem:[%s207_s0 + $0xb] sm:$0x1]  }
   0x2   :  { %7 = vrot.lane.b32.xlu0 %v101_v0, %s131_s10  ;;  %19 = vrot.lane.b32.xlu1 %v103_v1, %s132_s11  ;;  %s133_s14 = smov 88   ;;  %v102_v3 = vld [vmem:[%s207_s0 + $0xe] sm:$0x1]   ;;  %v104_v4 = vld [vmem:[%s207_s0 + $0xc] sm:$0x1]   ;;  %s134_s19 = smov 112  }
   0x3   :  { %31 = vrot.lane.b32.xlu2 %v105_v2, %s133_s14  ;;  %s135_s20 = smov 96   ;;  %v106_v5 = vld [vmem:[%s207_s0 + $0xa] sm:$0x1]   ;;  %s136_s23 = smov 80   ;;  %v107_v6 = vld [vmem:[%s207_s0 + $0x9] sm:$0x1]  }
   0x4   :  { %v108_v7 = vld [vmem:[%s207_s0 + $0x8] sm:$0x1]   ;;  %s137_s28 = smov 72   ;;  %s138_s29 = smov 64   ;;  %v109_v8 = vld [vmem:[%s207_s0 + $0x7] sm:$0x1]  }
   0x5   :  { %s139_s3 = smov 56   ;;  %v110_v9 = vld [vmem:[%s207_s0 + $0x6] sm:$0x1]   ;;  %v111_v10 = vld [vmem:[%s207_s0 + $0x5] sm:$0x1]   ;;  %s140_s8 = smov 48  }
   0x6   :  { %s141_s9 = smov 40   ;;  %v112_v11 = vld [vmem:[%s207_s0 + $0x4] sm:$0x1]   ;;  %s142_s12 = smov 32   ;;  %v113_v12 = vld [vmem:[%s207_s0 + $0x3] sm:$0x1]  }
   0x7   :  { %v114_v13 = vld [vmem:[%s207_s0 + $0x2] sm:$0x1]   ;;  %s143_s17 = smov 24   ;;  %s144_s18 = smov 16   ;;  %v115_v14 = vld [vmem:[%s207_s0 + $0x1] sm:$0x1]  }
   0x8   :  { %s145_s21 = smov 8   ;;  %v2_v15 = vld [vmem:[%s207_s0] sm:$0x1]   ;;  %vm27_vm4 = vcmask 851712   ;;  %vm33_vm5 = vcmask 786112   ;;  %vm39_vm6 = vcmask 720512  }
   0x9   :  { %4 = vst.msk [vmem:[#allocation0] sm:$0x1] %vm3_vm0, %v2_v15   ;;  %vm45_vm7 = vcmask 654912   ;;  %vm51_vm8 = vcmask 589312   ;;  %vm57_vm9 = vcmask 523712   ;;  %vm63_vm10 = vcmask 458112  }
   0xa   :  { %13 = vrot.lane.b32.xlu0 %v102_v3, %s134_s19  ;;  %25 = vrot.lane.b32.xlu1 %v104_v4, %s135_s20  ;;  %vm69_vm11 = vcmask 392512   ;;  %vm75_vm12 = vcmask 326912   ;;  %vm81_vm13 = vcmask 261312   ;;  %vm87_vm14 = vcmask 195712  }
   0xb   :  { %37 = vrot.lane.b32.xlu2 %v106_v5, %s136_s23  ;;  %vm93_vm15 = vcmask 130112  }
  0x12   :  { %43 = vrot.lane.b32.xlu0 %v107_v6, %s137_s28  ;;  %49 = vrot.lane.b32.xlu1 %v108_v7, %s138_s29 }
  0x13   :  { %55 = vrot.lane.b32.xlu2 %v109_v8, %s139_s3 }
  0x1a   :  { %61 = vrot.lane.b32.xlu0 %v110_v9, %s140_s8  ;;  %67 = vrot.lane.b32.xlu1 %v111_v10, %s141_s9 }
  0x1b   :  { %73 = vrot.lane.b32.xlu2 %v112_v11, %s142_s12 }
  0x22   :  { %79 = vrot.lane.b32.xlu0 %v113_v12, %s143_s17  ;;  %85 = vrot.lane.b32.xlu1 %v114_v13, %s144_s18 }
  0x23   :  { %91 = vrot.lane.b32.xlu2 %v115_v14, %s145_s21 }
  0x5d   :  { %v32_v16 = vpop.permute.xlu2 %31  }
  0x65   :  { %v38_v17 = vpop.permute.xlu2 %37  }
  0x6d   :  { %v56_v18 = vpop.permute.xlu2 %55  }
  0x74   :  { %v8_v19 = vpop.permute.xlu0 %7   ;;  %v20_v20 = vpop.permute.xlu1 %19  }
  0x75   :  { %10 = vst.msk [vmem:[#allocation0] sm:$0x1] %vm9_vm1, %v8_v19   ;;  %v74_v21 = vpop.permute.xlu2 %73  }
  0x7c   :  { %v14_v22 = vpop.permute.xlu0 %13   ;;  %v26_v23 = vpop.permute.xlu1 %25  }
  0x7d   :  { %16 = vst.msk [vmem:[#allocation0] sm:$0x1] %vm15_vm2, %v14_v22   ;;  %v92_v24 = vpop.permute.xlu2 %91  }
  0x7e   :  { %22 = vst.msk [vmem:[#allocation0] sm:$0x1] %vm21_vm3, %v20_v20  }
  0x7f   :  { %28 = vst.msk [vmem:[#allocation0] sm:$0x1] %vm27_vm4, %v26_v23  }
  0x80   :  { %34 = vst.msk [vmem:[#allocation0] sm:$0x1] %vm33_vm5, %v32_v16  }
  0x81   :  { %40 = vst.msk [vmem:[#allocation0] sm:$0x1] %vm39_vm6, %v38_v17  }
  0x84   :  { %v44_v25 = vpop.permute.xlu0 %43   ;;  %v50_v26 = vpop.permute.xlu1 %49  }
  0x85   :  { %46 = vst.msk [vmem:[#allocation0] sm:$0x1] %vm45_vm7, %v44_v25  }
  0x86   :  { %52 = vst.msk [vmem:[#allocation0] sm:$0x1] %vm51_vm8, %v50_v26  }
  0x87   :  { %58 = vst.msk [vmem:[#allocation0] sm:$0x1] %vm57_vm9, %v56_v18  }
  0x8c   :  { %v62_v27 = vpop.permute.xlu0 %61   ;;  %v68_v28 = vpop.permute.xlu1 %67  }
  0x8d   :  { %64 = vst.msk [vmem:[#allocation0] sm:$0x1] %vm63_vm10, %v62_v27  }
  0x8e   :  { %70 = vst.msk [vmem:[#allocation0] sm:$0x1] %vm69_vm11, %v68_v28  }
  0x8f   :  { %76 = vst.msk [vmem:[#allocation0] sm:$0x1] %vm75_vm12, %v74_v21  }
  0x94   :  { %v80_v29 = vpop.permute.xlu0 %79   ;;  %v86_v30 = vpop.permute.xlu1 %85  }
  0x95   :  { %82 = vst.msk [vmem:[#allocation0] sm:$0x1] %vm81_vm13, %v80_v29  }
  0x96   :  { %88 = vst.msk [vmem:[#allocation0] sm:$0x1] %vm87_vm14, %v86_v30  }
  0x97   :  { %94 = vst.msk [vmem:[#allocation0] sm:$0x1] %vm93_vm15, %v92_v24  }
  0x9e   :  { %v97_v31 = vld [vmem:[#allocation0] sm:$0x1] }
  0x9f   :  { %100 = vst [vmem:[%s208_s1] sm:$0x1] %v97_v31 }

// kernel: dct_residual_block.4
= control target key start
LH: loop header
LB: loop body
LE: loop exit
PB: predicated region body
PF: predicated region fallthrough
CT: control target
= control target key end

     0   :  { %vm25_vm0 = vcmask 1040384   ;;  %vm26_vm1 = vsmask.f32 256  ;;  %v28_v8 = vld [vmem:[#allocation2] sm:$0x1]  ;;  %vm36_vm4 = vcmask 1041409   ;;  %s979_s3 = inlined_call_operand.vmem [shape: bf16[3,128,128], index: 3, kind: input, shape index: {}]   ;;  %s980_s0 = inlined_call_operand.vmem [shape: bf16[2,16,128], index: 0, kind: input, shape index: {}]   ;;  %s981_s1 = inlined_call_operand.vmem [shape: f32[1,128], index: 1, kind: input, shape index: {}]   ;;  %s982_s2 = inlined_call_operand.vmem [shape: f32[1,128], index: 2, kind: input, shape index: {}]   ;;  %s983_s5 = inlined_call_operand.vmem [shape: f32[1,2,128], index: 5, kind: output, shape index: {1}]   ;;  %s984_s4 = inlined_call_operand.vmem [shape: bf16[2,16,128], index: 4, kind: output, shape index: {0}]  }
   0x1   :  { %v727_v0 = vld [vmem:[%s979_s3 + $0x38] sm:$0xff]  ;;  %v726_v3 = vld [vmem:[%s979_s3 + $0x30] sm:$0xff]  ;;  %v725_v6 = vld [vmem:[%s979_s3 + $0x28] sm:$0xff]  ;;  %vm31_vm2 = vsmask.f32 7938  ;;  %vm90_vm11 = vcmask 1043456  }
   0x2   :  { %v743_v1 = vld [vmem:[%s979_s3 + $0xb8] sm:$0xff]  ;;  %356 = vmatpush.bf16.msra.mxu1 %v727_v0  ;;  %v742_v4 = vld [vmem:[%s979_s3 + $0xb0] sm:$0xff]  ;;  %v741_v7 = vld [vmem:[%s979_s3 + $0xa8] sm:$0xff]  ;;  %vm37_vm6 = vsmask.f32 1280  ;;  %vm140_vm13 = vcmask 1043457  }
   0x3   :  { %v735_v2 = vld [vmem:[%s979_s3 + $0x78] sm:$0xff]  ;;  %457 = vmatpush.bf16.msra.mxu2 %v743_v1  ;;  %v734_v5 = vld [vmem:[%s979_s3 + $0x70] sm:$0xff]  ;;  %v733_v9 = vld [vmem:[%s979_s3 + $0x68] sm:$0xff]  ;;  %vm42_vm8 = vsmask.f32 7942  ;;  %vm147_vm15 = vcmask 1041408  }
   0x4   :  { %279 = vmatpush.bf16.msra.mxu0 %v735_v2  ;;  %765 = vmatpush.bf16.msra.mxu3 %v735_v2  ;;  %v724_v10 = vld [vmem:[%s979_s3 + $0x20] sm:$0xff]  ;;  %vm842_vm3 = vmand %vm25_vm0, %vm26_vm1  ;;  %v33_v13 = vld [vmem:[#allocation2 + $0x8] sm:$0x1]  ;;  %vm68_vm10 = vsmask.f32 4368 }
   0x5   :  { %v740_v11 = vld [vmem:[%s979_s3 + $0xa0] sm:$0xff]  ;;  %v29_v15 = vsel %vm842_vm3, 0, %v28_v8  ;;  %vm32_vm5 = vmand %vm25_vm0, %vm31_vm2  ;;  %v761_v21 = vld [vmem:[%s980_s0 + $0x8] sm:$0xff]   ;;  %vm116_vm12 = vsmask.f32 5392 }
   0x6   :  { %357 = vmatpush.bf16.msra.mxu1 %v726_v3  ;;  %v732_v14 = vld [vmem:[%s979_s3 + $0x60] sm:$0xff]  ;;  %30 = vst [vmem:[#allocation2] sm:$0x1] %v29_v15  ;;  %v34_v17 = vsel %vm32_vm5, 0, %v33_v13  ;;  %v750_v23 = vunpack.c.l.bf16 %v761_v21  ;;  %v751_v24 = vunpack.c.h.bf16 %v761_v21  ;;  %v39_v25 = vld [vmem:[#allocation2 + $0x8] sm:$0x2]  ;;  %vm38_vm7 = vmand %vm36_vm4, %vm37_vm6 }
   0x7   :  { %458 = vmatpush.bf16.msra.mxu2 %v742_v4  ;;  %v745_v16 = vld [vmem:[%s980_s0] sm:$0xff]   ;;  %35 = vst [vmem:[#allocation2 + $0x8] sm:$0x1] %v34_v17  ;;  %v40_v30 = vsel %vm38_vm7, 0, %v39_v25  ;;  %v44_v31 = vld [vmem:[#allocation2 + $0x10] sm:$0x2]  ;;  %vm43_vm9 = vmand %vm36_vm4, %vm42_vm8 }
   0x8   :  { %280 = vmatpush.bf16.msra.mxu0 %v734_v5  ;;  %766 = vmatpush.bf16.msra.mxu3 %v734_v5  ;;  %v746_v18 = vunpack.c.l.bf16 %v745_v16  ;;  %v747_v19 = vunpack.c.h.bf16 %v745_v16  ;;  %v774_v20 = vld [vmem:[%s981_s1] ss:$0 sm:$0xff]  ;;  %v723_v32 = vld [vmem:[%s979_s3 + $0x18] sm:$0xff]  ;;  %41 = vst [vmem:[#allocation2 + $0x8] sm:$0x2] %v40_v30  ;;  %v45_v41 = vsel %vm43_vm9, 0, %v44_v31  ;;  %vm898_vm14 = vmor %vm26_vm1, %vm68_vm10 }
   0x9   :  { %v775_v22 = vld [vmem:[%s982_s2] ss:$0 sm:$0xff]  ;;  %v107_v28 = vmul.f32 %v774_v20, %v750_v23  ;;  %v108_v29 = vmul.f32 %v774_v20, %v751_v24  ;;  %v739_v33 = vld [vmem:[%s979_s3 + $0x98] sm:$0xff]  ;;  %46 = vst [vmem:[#allocation2 + $0x10] sm:$0x2] %v45_v41  ;;  %v722_v44 = vld [vmem:[%s979_s3 + $0x10] sm:$0xff] }
   0xa   :  { %358 = vmatpush.bf16.msra.mxu1 %v725_v6  ;;  %v56_v26 = vmul.f32 %v774_v20, %v746_v18  ;;  %v57_v27 = vmul.f32 %v774_v20, %v747_v19  ;;  %v731_v36 = vld [vmem:[%s979_s3 + $0x58] sm:$0xff]  ;;  %v738_v45 = vld [vmem:[%s979_s3 + $0x90] sm:$0xff]  ;;  %v721_v55 = vld [vmem:[%s979_s3 + $0x8] sm:$0xff]  ;;  %vm204_vm5 = vsmask.f32 7424  ;;  %vm514_vm7 = vcmask 1046532  }
   0xb   :  { %459 = vmatpush.bf16.msra.mxu2 %v741_v7  ;;  %v109_v37 = vadd.f32 %v775_v22, %v107_v28  ;;  %v110_v38 = vadd.f32 %v775_v22, %v108_v29  ;;  %v730_v48 = vld [vmem:[%s979_s3 + $0x50] sm:$0xff]  ;;  %v737_v56 = vld [vmem:[%s979_s3 + $0x88] sm:$0xff]  ;;  %vm904_vm0 = vmand %vm90_vm11, %vm31_vm2  ;;  %vm531_vm9 = vcmask 1045504  }
   0xc   :  { %281 = vmatpush.bf16.msra.mxu0 %v733_v9  ;;  %767 = vmatpush.bf16.msra.mxu3 %v733_v9  ;;  %v61_v34 = vadd.f32 %v775_v22, %v56_v26  ;;  %v62_v35 = vadd.f32 %v775_v22, %v57_v27  ;;  %v729_v61 = vld [vmem:[%s979_s3 + $0x48] sm:$0xff]  ;;  %vm910_vm1 = vmand %vm140_vm13, %vm42_vm8  ;;  %v720_v15 = vld [vmem:[%s979_s3] sm:$0xff] }
   0xd   :  { %v111_v42 = vmax.f32 %v109_v37, 0.0  ;;  %v112_v43 = vmax.f32 %v110_v38, 0.0  ;;  %v93_v1 = vld [vmem:[#allocation2] sm:$0xf]  ;;  %vm919_vm2 = vmor %vm37_vm6, %vm116_vm12 }
   0xe   :  { %359 = vmatpush.bf16.msra.mxu1 %v724_v10  ;;  %v63_v39 = vmax.f32 %v61_v34, 0.0  ;;  %v64_v40 = vmax.f32 %v62_v35, 0.0  ;;  %v99_v3 = vld [vmem:[#allocation2 + $0x8] sm:$0x1]  ;;  %v736_v19 = vld [vmem:[%s979_s3 + $0x80] sm:$0xff]  ;;  %vm148_vm4 = vmand %vm147_vm15, %vm37_vm6  ;;  %vm513_vm6 = vcmask 1042432  }
   0xf   :  { %460 = vmatpush.bf16.msra.mxu2 %v740_v11  ;;  %v113_v49 = vpack.c.bf16 %v111_v42, %v111_v42  ;;  %v114_v50 = vpack.c.bf16 %v112_v43, %v112_v43  ;;  %v728_v24 = vld [vmem:[%s979_s3 + $0x40] sm:$0xff]  ;;  %vm949_vm8 = vmor %vm513_vm6, %vm514_vm7 }
  0x10   :  { %282 = vmatpush.bf16.msra.mxu0 %v732_v14  ;;  %768 = vmatpush.bf16.msra.mxu3 %v732_v14  ;;  %v65_v46 = vpack.c.bf16 %v63_v39, %v63_v39  ;;  %v66_v47 = vpack.c.bf16 %v64_v40, %v64_v40  ;;  %v143_v14 = vld [vmem:[#allocation2 + $0x8] sm:$0xe]  ;;  %v149_v23 = vld [vmem:[#allocation2 + $0x10] sm:$0x3] }
  0x11   :  { %v119_v57 = vshrl.u32 %v113_v49, 16  ;;  %v122_v58 = vshll.u32 %v113_v49, 16  ;;  %v128_v59 = vshrl.u32 %v114_v50, 16  ;;  %v131_v60 = vshll.u32 %v114_v50, 16 }
  0x12   :  { %360 = vmatpush.bf16.msra.mxu1 %v723_v32  ;;  %v71_v51 = vshrl.u32 %v65_v46, 16  ;;  %v74_v52 = vshll.u32 %v65_v46, 16  ;;  %v79_v53 = vshrl.u32 %v66_v47, 16  ;;  %v82_v54 = vshll.u32 %v66_v47, 16 }
  0x13   :  { %461 = vmatpush.bf16.msra.mxu2 %v739_v33  ;;  %v121_v4 = vrot.slane %v119_v57, 6  ;;  %v124_v5 = vrot.slane %v122_v58, 7  ;;  %v130_v6 = vrot.slane %v128_v59, 6  ;;  %v133_v7 = vrot.slane %v131_v60, 7 }
  0x14   :  { %283 = vmatpush.bf16.msra.mxu0 %v731_v36  ;;  %769 = vmatpush.bf16.msra.mxu3 %v731_v36  ;;  %v73_v63 = vrot.slane %v71_v51, 7  ;;  %v81_v0 = vrot.slane %v79_v53, 7 }
  0x15   :  { %v125_v17 = vor.u32 %v124_v5, %v121_v4  ;;  %v134_v18 = vor.u32 %v133_v7, %v130_v6 }
  0x16   :  { %361 = vmatpush.bf16.msra.mxu1 %v722_v44  ;;  %v76_v8 = vor.u32 %v74_v52, %v73_v63  ;;  %v77_v9 = vrot.slane %v73_v63, 4  ;;  %v84_v10 = vor.u32 %v82_v54, %v81_v0  ;;  %v86_v11 = vrot.slane %v81_v0, 4 }
  0x17   :  { %462 = vmatpush.bf16.msra.mxu2 %v738_v45  ;;  %v126_v25 = vrot.slane %v125_v17, 4  ;;  %v144_v26 = vsel %vm910_vm1, %v125_v17, %v143_v14  ;;  %v136_v27 = vrot.slane %v134_v18, 4  ;;  %v776_v63 = vmov 0.0  }
  0x18   :  { %284 = vmatpush.bf16.msra.mxu0 %v730_v48  ;;  %770 = vmatpush.bf16.msra.mxu3 %v730_v48  ;;  %v85_v20 = vsel %vm898_vm14, %v77_v9, %v84_v10  ;;  %v94_v21 = vsel %vm904_vm0, %v76_v8, %v93_v1  ;;  %v100_v22 = vsel %vm842_vm3, %v86_v11, %v99_v3  ;;  %vm400_vm3 = vcmask 1046528  }
  0x19   :  { %95 = vst [vmem:[#allocation2] sm:$0xf] %v94_v21  ;;  %v135_v12 = vsel %vm919_vm2, %v126_v25, %v134_v18  ;;  %v150_v28 = vsel %vm148_vm4, %v136_v27, %v149_v23 }
  0x1a   :  { %362 = vmatpush.bf16.msra.mxu1 %v721_v55  ;;  %96 = vst [vmem:[#allocation2 + $0x4] sm:$0xf] %v85_v20 }
  0x1b   :  { %463 = vmatpush.bf16.msra.mxu2 %v737_v56  ;;  %101 = vst [vmem:[#allocation2 + $0x8] sm:$0x1] %v100_v22 }
  0x1c   :  { %285 = vmatpush.bf16.msra.mxu0 %v729_v61  ;;  %771 = vmatpush.bf16.msra.mxu3 %v729_v61  ;;  %145 = vst [vmem:[#allocation2 + $0x8] sm:$0xe] %v144_v26 }
  0x1d   :  { %146 = vst [vmem:[#allocation2 + $0xc] sm:$0xf] %v135_v12 }
  0x1e   :  { %363 = vmatpush.bf16.msra.mxu1 %v720_v15  ;;  %151 = vst [vmem:[#allocation2 + $0x10] sm:$0x3] %v150_v28 }
  0x1f   :  { %464 = vmatpush.bf16.msra.mxu2 %v736_v19  ;;  %24 = vst [vmem:[%s983_s5] sm:$0x3] %v776_v63 }
  0x20   :  { %286 = vmatpush.bf16.msra.mxu0 %v728_v24  ;;  %772 = vmatpush.bf16.msra.mxu3 %v728_v24  ;;  %v763_v29 = vld [vmem:[#allocation2] sm:$0xe] }
  0x21   :  { %v753_v30 = vld [vmem:[#allocation2] sm:$0xff]  }
  0x22   :  { %v762_v31 = vld [vmem:[#allocation2] sm:$0xf0]  ;;  %v206_v32 = vshrl.u32 %v753_v30, 16  ;;  %v208_v33 = vshll.u32 %v753_v30, 16  ;;  %364 = vmatmul.bf16.vlgmr.msra.gmra.mxu1 %v753_v30 }
  0x23   :  { %v764_v34 = vor.u32 %v763_v29, %v762_v31 }
  0x24   :  { %v210_v35 = vrot.slane %v208_v33, 1  ;;  %v719_v36 = vld [vmem:[#allocation2 + $0x8] sm:$0xff] }
  0x25   :  { %v401_v37 = vrot.slane %v764_v34, 1  ;;  %v173_v38 = vld [vmem:[#allocation2 + $0x10] sm:$0x3]  ;;  %v402_v39 = vrot.slane %v719_v36, 1  ;;  %v213_v41 = vshll.u32 %v719_v36, 16  ;;  %v217_v43 = vshrl.u32 %v719_v36, 16 }
  0x26   :  { %v211_v40 = vor.u32 %v210_v35, %v206_v32  ;;  %v200_v42 = vunpack.c.l.b16 %v173_v38  ;;  %v156_v55 = vld [vmem:[#allocation2 + $0x10] sm:$0x1] }
  0x27   :  { %v403_v44 = vsel %vm400_vm3, %v401_v37, %v402_v39  ;;  %v215_v45 = vrot.slane %v213_v41, 1  ;;  %v303_v56 = vunpack.c.l.b16 %v156_v55 }
  0x28   :  { %v203_v46 = vpack.c.b16 %v200_v42, %v200_v42  ;;  %465 = vmatmul.bf16.vlgmr.msra.gmra.mxu2 %v403_v44 }
  0x29   :  { %v216_v47 = vsel %vm204_vm5, %v211_v40, %v215_v45  ;;  %v219_v48 = vor.u32 %v217_v43, %v215_v45  ;;  %v304_v58 = vpack.c.b16 %v303_v56, %v303_v56 }
  0x2a   :  { %v221_v49 = vshll.u32 %v203_v46, 16  ;;  %287 = vmatmul.bf16.vlgmr.msra.gmra.mxu0 %v216_v47  ;;  %v404_v52 = vrot.slane %v203_v46, 1  ;;  %v225_v54 = vshrl.u32 %v203_v46, 16 }
  0x2c   :  { %v223_v50 = vrot.slane %v221_v49, 1  ;;  %v405_v53 = vsel %vm400_vm3, %v402_v39, %v404_v52 }
  0x2e   :  { %v224_v51 = vsel %vm204_vm5, %v219_v48, %v223_v50  ;;  %v227_v57 = vor.u32 %v225_v54, %v223_v50 }
  0x2f   :  { %292 = vmatmul.bf16.vlgmr.msra.gmra.mxu3 %v224_v51 }
  0x32   :  { %369 = vmatmul.bf16.gmra.mxu1 %v719_v36 }
  0x38   :  { %470 = vmatmul.bf16.gmra.mxu2 %v405_v53 }
  0x3f   :  { %297 = vmatmul.bf16.gmra.mxu3 %v227_v57 }
  0x42   :  { %374 = vmatmul.bf16.gmra.mxu1 %v304_v58 }
  0x48   :  { %475 = vmatmul.bf16.gmra.mxu2 %v404_v52 }
  0x9f   :  { %v365_v59 = vpop.f32.mrf.mxu1 }
  0xa7   :  { %v367_v60 = vpop.f32.mrf.mxu1  ;;  %v288_v61 = vpop.f32.mrf.mxu0 }
  0xa8   :  { %v366_v2 = vadd.f32 %v365_v59, %v288_v61 }
  0xab   :  { %v466_v62 = vpop.f32.mrf.mxu2 }
  0xac   :  { %v480_v6 = vadd.f32 %v466_v62, %v366_v2 }
  0xae   :  { %v497_v22 = vmul.f32 %v480_v6, %v480_v6 }
  0xaf   :  { %v370_v0 = vpop.f32.mrf.mxu1  ;;  %v290_v1 = vpop.f32.mrf.mxu0 }
  0xb0   :  { %v368_v4 = vadd.f32 %v367_v60, %v290_v1 }
  0xb2   :  { %v293_v3 = vpop.f32.mrf.mxu3 }
  0xb3   :  { %v468_v5 = vpop.f32.mrf.mxu2  ;;  %v371_v13 = vadd.f32 %v370_v0, %v293_v3 }
  0xb4   :  { %v481_v7 = vadd.f32 %v468_v5, %v368_v4 }
  0xb6   :  { %v759_v8 = vpack.c.bf16 %v481_v7, %v480_v6  ;;  %v498_v18 = vmul.f32 %v481_v7, %v481_v7  ;;  %v489_v23 = vadd.f32 %v481_v7, %v480_v6 }
  0xb7   :  { %v372_v9 = vpop.f32.mrf.mxu1 }
  0xb8   :  { %760 = vst [vmem:[%s984_s4] sm:$0xff] %v759_v8   ;;  %v499_v26 = vadd.f32 %v498_v18, %v497_v22  ;;  %v490_v30 = vrot.slane %v489_v23, 4 }
  0xba   :  { %v295_v10 = vpop.f32.mrf.mxu3  ;;  %v500_v34 = vrot.slane %v499_v26, 4  ;;  %v491_v39 = vadd.f32 %v490_v30, %v489_v23 }
  0xbb   :  { %v471_v11 = vpop.f32.mrf.mxu2  ;;  %v373_v17 = vadd.f32 %v372_v9, %v295_v10 }
  0xbc   :  { %v482_v15 = vadd.f32 %v471_v11, %v371_v13  ;;  %v501_v45 = vadd.f32 %v500_v34, %v499_v26  ;;  %v492_v52 = vrot.slane %v491_v39, 2  ;;  %v568_v13 = vld [vmem:[%s983_s5] sm:$0x1] }
  0xbe   :  { %v507_v20 = vpack.c.bf16 %v482_v15, %v482_v15  ;;  %v547_v35 = vmul.f32 %v482_v15, %v482_v15  ;;  %v532_v40 = vrot.slane %v482_v15, 2  ;;  %v502_v57 = vrot.slane %v501_v45, 2 }
  0xbf   :  { %v375_v14 = vpop.f32.mrf.mxu1  ;;  %v493_v61 = vadd.f32 %v492_v52, %v491_v39 }
  0xc0   :  { %v716_v12 = vrot.slane %v507_v20, 9  ;;  %v553_v46 = vrot.slane %v547_v35, 2  ;;  %v503_v0 = vadd.f32 %v502_v57, %v501_v45 }
  0xc1   :  { %v494_v3 = vrot.slane %v493_v61, 1 }
  0xc2   :  { %v298_v16 = vpop.f32.mrf.mxu3  ;;  %v504_v6 = vrot.slane %v503_v0, 1 }
  0xc3   :  { %v473_v19 = vpop.f32.mrf.mxu2  ;;  %v376_v29 = vadd.f32 %v375_v14, %v298_v16  ;;  %v495_v9 = vadd.f32 %v494_v3, %v493_v61 }
  0xc4   :  { %v483_v21 = vadd.f32 %v473_v19, %v373_v17  ;;  %v505_v14 = vadd.f32 %v504_v6, %v503_v0  ;;  %v571_v17 = vld [vmem:[%s983_s5 + $0x1] sm:$0x1] }
  0xc6   :  { %v508_v24 = vpack.c.bf16 %v483_v21, %v483_v21  ;;  %v548_v33 = vmul.f32 %v483_v21, %v483_v21  ;;  %v533_v36 = vrot.slane %v483_v21, 2 }
  0xc7   :  { %v377_v25 = vpop.f32.mrf.mxu1 }
  0xc8   :  { %v518_v28 = vrot.slane %v508_v24, 5  ;;  %v554_v41 = vrot.slane %v548_v33, 2  ;;  %v534_v47 = vsel %vm531_vm9, %v532_v40, %v533_v36 }
  0xca   :  { %v300_v31 = vpop.f32.mrf.mxu3  ;;  %v519_v32 = vsel %vm949_vm8, %v716_v12, %v518_v28  ;;  %v520_v48 = vrot.slane %v518_v28, 4  ;;  %v555_v54 = vsel %vm531_vm9, %v553_v46, %v554_v41 }
  0xcb   :  { %717 = vst [vmem:[%s984_s4 + $0x8] sm:$0xf] %v519_v32  ;;  %v476_v37 = vpop.f32.mrf.mxu2 }
  0xcc   :  { %v484_v38 = vadd.f32 %v476_v37, %v376_v29 }
  0xce   :  { %v509_v42 = vpack.c.bf16 %v484_v38, %v484_v38  ;;  %v535_v43 = vrot.slane %v484_v38, 2  ;;  %v549_v44 = vmul.f32 %v484_v38, %v484_v38 }
  0xd0   :  { %v521_v49 = vrot.slane %v509_v42, 5  ;;  %v536_v50 = vsel %vm531_vm9, %v533_v36, %v535_v43  ;;  %v556_v51 = vrot.slane %v549_v44, 2 }
  0xd1   :  { %v539_v53 = vadd.f32 %v536_v50, %v534_v47 }
  0xd2   :  { %v522_v55 = vsel %vm949_vm8, %v520_v48, %v521_v49  ;;  %v557_v56 = vsel %vm531_vm9, %v554_v41, %v556_v51 }
  0xd3   :  { %718 = vst [vmem:[%s984_s4 + $0xc] sm:$0xf] %v522_v55  ;;  %v540_v58 = vrot.slane %v539_v53, 4  ;;  %v560_v59 = vadd.f32 %v557_v56, %v555_v54  ;;  %v478_v60 = vpop.f32.mrf.mxu2 }
  0xd5   :  { %v541_v62 = vadd.f32 %v540_v58, %v539_v53  ;;  %v561_v63 = vrot.slane %v560_v59, 4 }
  0xd7   :  { %v542_v1 = vrot.slane %v541_v62, 2  ;;  %v562_v2 = vadd.f32 %v561_v63, %v560_v59 }
  0xd9   :  { %v543_v4 = vadd.f32 %v542_v1, %v541_v62  ;;  %v563_v5 = vrot.slane %v562_v2, 2 }
  0xdb   :  { %v544_v7 = vrot.slane %v543_v4, 1  ;;  %v564_v8 = vadd.f32 %v563_v5, %v562_v2 }
  0xdd   :  { %v545_v10 = vadd.f32 %v544_v7, %v543_v4  ;;  %v565_v11 = vrot.slane %v564_v8, 1 }
  0xdf   :  { %v546_v15 = vadd.f32 %v545_v10, %v495_v9  ;;  %v566_v16 = vadd.f32 %v565_v11, %v564_v8 }
  0xe1   :  { %v567_v18 = vadd.f32 %v566_v16, %v505_v14  ;;  %v569_v19 = vadd.f32 %v568_v13, %v546_v15 }
  0xe3   :  { %570 = vst [vmem:[%s983_s5] sm:$0x1] %v569_v19  ;;  %v572_v20 = vadd.f32 %v571_v17, %v567_v18 }
  0xe5   :  { %573 = vst [vmem:[%s983_s5 + $0x1] sm:$0x1] %v572_v20 }

// kernel: dct_residual_block.5
= control target key start
LH: loop header
LB: loop body
LE: loop exit
PB: predicated region body
PF: predicated region fallthrough
CT: control target
= control target key end

     0   :  { %vm98_vm0 = vcmask 523264   ;;  %s268_s4 = inlined_call_operand.vmem [shape: bf16[64,128], index: 4, kind: input, shape index: {}]   ;;  %s269_s0 = inlined_call_operand.vmem [shape: bf16[2,16,128], index: 0, kind: input, shape index: {}]   ;;  %s270_s2 = inlined_call_operand.vmem [shape: f32[1,128], index: 2, kind: input, shape index: {}]   ;;  %s271_s3 = inlined_call_operand.vmem [shape: f32[1,128], index: 3, kind: input, shape index: {}]   ;;  %s272_s5 = inlined_call_operand.vmem [shape: f32[1,128], index: 5, kind: input, shape index: {}]   ;;  %s273_s1 = inlined_call_operand.vmem [shape: bf16[2,16,64], index: 1, kind: input, shape index: {}]   ;;  %s274_s6 = inlined_call_operand.vmem [shape: f32[2,16,128], index: 6, kind: output, shape index: {}]  }
   0x1   :  { %v171_v0 = vld [vmem:[%s268_s4 + $0x18] sm:$0xff]  ;;  %v170_v1 = vld [vmem:[%s268_s4 + $0x10] sm:$0xff]  ;;  %v173_v2 = vld [vmem:[%s269_s0] sm:$0xff]  }
   0x2   :  { %109 = vmatpush.bf16.msra.mxu0 %v171_v0  ;;  %181 = vmatpush.bf16.msra.mxu1 %v171_v0  ;;  %v185_v3 = vld [vmem:[%s270_s2] ss:$0 sm:$0xff]  ;;  %v174_v4 = vunpack.c.l.bf16 %v173_v2  ;;  %v169_v7 = vld [vmem:[%s268_s4 + $0x8] sm:$0xff]  ;;  %v175_v16 = vunpack.c.h.bf16 %v173_v2 }
   0x3   :  { %v186_v5 = vld [vmem:[%s271_s3] ss:$0 sm:$0xff]  ;;  %v167_v11 = vld [vmem:[%s273_s1 + $0x8] sm:$0xff] }
   0x4   :  { %v36_v6 = vmul.f32 %v185_v3, %v174_v4  ;;  %v168_v9 = vld [vmem:[%s268_s4] sm:$0xff]  ;;  %v180_v12 = vld [vmem:[%s269_s0 + $0x8] sm:$0xff]   ;;  %v37_v18 = vmul.f32 %v185_v3, %v175_v16 }
   0x5   :  { %v166_v10 = vld [vmem:[%s273_s1] sm:$0xff]  ;;  %v178_v13 = vunpack.c.l.bf16 %v180_v12  ;;  %v179_v17 = vunpack.c.h.bf16 %v180_v12 }
   0x6   :  { %110 = vmatpush.bf16.msra.mxu0 %v170_v1  ;;  %182 = vmatpush.bf16.msra.mxu1 %v170_v1  ;;  %v44_v8 = vadd.f32 %v186_v5, %v36_v6  ;;  %v45_v20 = vadd.f32 %v186_v5, %v37_v18  ;;  %v187_v22 = vld [vmem:[%s272_s5] ss:$0 sm:$0xff] }
   0x7   :  { %v38_v14 = vmul.f32 %v185_v3, %v178_v13  ;;  %v39_v19 = vmul.f32 %v185_v3, %v179_v17 }
   0x9   :  { %v46_v15 = vadd.f32 %v186_v5, %v38_v14  ;;  %v47_v21 = vadd.f32 %v186_v5, %v39_v19 }
   0xa   :  { %111 = vmatpush.bf16.msra.mxu0 %v169_v7  ;;  %183 = vmatpush.bf16.msra.mxu1 %v169_v7 }
   0xe   :  { %112 = vmatpush.bf16.msra.mxu0 %v168_v9  ;;  %184 = vmatpush.bf16.msra.mxu1 %v168_v9 }
  0x11   :  { %164 = vmatmul.msk.bf16.vlgmr.msra.gmra.mxu0 %vm98_vm0, %v166_v10  ;;  %165 = vmatmul.msk.bf16.vlgmr.msra.gmra.mxu1 %vm98_vm0, %v167_v11 }
  0x8e   :  { %v114_v23 = vpop.f32.mrf.mxu0  ;;  %v119_v24 = vpop.f32.mrf.mxu1 }
  0x8f   :  { %v115_v25 = vadd.f32 %v187_v22, %v114_v23  ;;  %v120_v26 = vadd.f32 %v187_v22, %v119_v24 }
  0x91   :  { %v124_v27 = vadd.f32 %v115_v25, %v44_v8  ;;  %v126_v28 = vadd.f32 %v120_v26, %v46_v15 }
  0x93   :  { %v128_v29 = vmax.f32 %v124_v27, 0.0  ;;  %v130_v30 = vmax.f32 %v126_v28, 0.0 }
  0x95   :  { %132 = vst [vmem:[%s274_s6] sm:$0xff] %v128_v29 }
  0x96   :  { %134 = vst [vmem:[%s274_s6 + $0x10] sm:$0xff] %v130_v30  ;;  %v116_v31 = vpop.f32.mrf.mxu0  ;;  %v121_v32 = vpop.f32.mrf.mxu1 }
  0x97   :  { %v117_v33 = vadd.f32 %v187_v22, %v116_v31  ;;  %v122_v34 = vadd.f32 %v187_v22, %v121_v32 }
  0x99   :  { %v125_v35 = vadd.f32 %v117_v33, %v45_v20  ;;  %v127_v36 = vadd.f32 %v122_v34, %v47_v21 }
  0x9b   :  { %v129_v37 = vmax.f32 %v125_v35, 0.0  ;;  %v131_v38 = vmax.f32 %v127_v36, 0.0 }
  0x9d   :  { %133 = vst [vmem:[%s274_s6 + $0x8] sm:$0xff] %v129_v37 }
  0x9e   :  { %135 = vst [vmem:[%s274_s6 + $0x18] sm:$0xff] %v131_v38 }

</bundles_post_ra>
